<compile_context>
chip_gen: v6e
topology: v6e:2x2x1
jax: 0.10.0
libtpu: 0.0.40
codegen_flags: <defaults>
</compile_context>

<pallas_src>
import functools

import jax
import jax.numpy as jnp
from jax.experimental import pallas as pl
from jax.experimental.pallas import tpu as pltpu


def acrnet_kernel(x_ref, w1_ref, b1_ref, w2_ref, b2_ref, w3t_ref, b3_ref, o_ref):
    # Cast the input tile in-kernel (no separate wrapper-side HBM cast pass).
    x = x_ref[0].astype(jnp.bfloat16)                      # (C_in, tile_m) bf16

    # Stage 1: 1x1 conv (C_in -> 256). bf16 MXU operands, f32 accumulate,
    # bias + ReLU in f32, materialize only the bf16 result.
    h1 = jnp.maximum(
        jnp.dot(w1_ref[...], x, preferred_element_type=jnp.float32)
        + b1_ref[...],
        0.0,
    ).astype(jnp.bfloat16)                                 # (256, tile_m) bf16
    # (Dropout p=0.3 -> identity at inference)

    # Stage 2: 1x1 conv (256 -> 256), same fused bias + ReLU + bf16 cast.
    h2 = jnp.maximum(
        jnp.dot(w2_ref[...], h1, preferred_element_type=jnp.float32)
        + b2_ref[...],
        0.0,
    ).astype(jnp.bfloat16)                                 # (256, tile_m) bf16
    # (Dropout p=0.3 -> identity at inference)

    # Stage 3: degenerate 1-output-row 1x1 conv (256 -> 1) done on the
    # VPU/XLU instead of the MXU: broadcast w3 (stored as (256, 1)) over the
    # lane axis, multiply in f32, reduce over the channel/sublane axis.
    logits = (
        jnp.sum(h2.astype(jnp.float32) * w3t_ref[...], axis=0, keepdims=True)
        + b3_ref[...]
    )                                                      # (1, tile_m) f32
    # Sigmoid lands on the EUP slot.
    o_ref[0] = jax.nn.sigmoid(logits).astype(o_ref.dtype)


def acrnet_forward(x_nchw, params, *, tile_m=4096):
    """x_nchw: (N, C_in, H, W) float32. Returns iou of shape (N, 1, H, W),
    matching the PyTorch module (sigmoid of the last 1x1 conv)."""
    w1, b1, w2, b2, w3, b3 = params
    N, C, H, W = x_nchw.shape
    M = H * W
    tile_m = min(tile_m, M)
    assert tile_m % 128 == 0 and M % tile_m == 0, (
        "H*W must be a multiple of 128 and divisible by tile_m for this demo")
    # TODO(synk): general H*W needs padding/masking on the last M tile.

    # Native-order reshape (no transpose, no dtype cast): (N, C, H, W) -> (N, C, M).
    x3d = x_nchw.reshape(N, C, M)
    # Tiny per-call casts of the resident weights (cheap; params stay f32 for
    # the reference check). Biases stay f32 (bias/ReLU math is f32 in-kernel).
    w1b = w1.astype(jnp.bfloat16)
    w2b = w2.astype(jnp.bfloat16)
    w3t = w3.T                       # (256, 1) f32 for the VPU/XLU stage 3

    H1 = w1.shape[0]   # 256
    H2 = w2.shape[0]   # 256
    CO = w3.shape[0]   # 1

    out3d = pl.pallas_call(
        acrnet_kernel,
        out_shape=jax.ShapeDtypeStruct((N, CO, M), jnp.float32),
        grid_spec=pltpu.PrefetchScalarGridSpec(
            num_scalar_prefetch=0,
            grid=(N, M // tile_m),
            in_specs=[
                pl.BlockSpec((1, C, tile_m), lambda n, i: (n, 0, i)),  # x tile (f32)
                pl.BlockSpec((H1, C), lambda n, i: (0, 0)),            # w1 (resident)
                pl.BlockSpec((H1, 1), lambda n, i: (0, 0)),            # b1
                pl.BlockSpec((H2, H1), lambda n, i: (0, 0)),           # w2
                pl.BlockSpec((H2, 1), lambda n, i: (0, 0)),            # b2
                pl.BlockSpec((H2, CO), lambda n, i: (0, 0)),           # w3^T (256,1)
                pl.BlockSpec((CO, 1), lambda n, i: (0, 0)),            # b3
            ],
            out_specs=pl.BlockSpec((1, CO, tile_m), lambda n, i: (n, 0, i)),
        ),
        compiler_params=pltpu.CompilerParams(
            dimension_semantics=("parallel", "parallel"),
            vmem_limit_bytes=48 * 1024 * 1024),
    )(x3d, w1b, b1, w2b, b2, w3t, b3)

    # (N, 1, M) -> (N, 1, H, W): pure reshape, no transpose needed.
    return out3d.reshape(N, CO, H, W)


def init_params(key, in_channels):
    """Deterministic init mimicking PyTorch Conv2d default (uniform bounds).
    Weights stored as (C_out, C_in) matrices (1x1 conv == matmul over C);
    biases stored as (C_out, 1) so they broadcast over the pixel/lane axis."""
    def conv_init(k, cin, cout):
        kw, kb = jax.random.split(k)
        bound = 1.0 / jnp.sqrt(cin)  # kernel_size = 1
        w = jax.random.uniform(kw, (cout, cin), jnp.float32, -bound, bound)
        b = jax.random.uniform(kb, (cout, 1), jnp.float32, -bound, bound)
        return w, b

    k1, k2, k3 = jax.random.split(key, 3)
    w1, b1 = conv_init(k1, in_channels, 256)
    w2, b2 = conv_init(k2, 256, 256)
    w3, b3 = conv_init(k3, 256, 1)
    return (w1, b1, w2, b2, w3, b3)


def reference_forward(x_nchw, params):
    """Pure-JAX f32 reference (same math), for a sanity check."""
    w1, b1, w2, b2, w3, b3 = params
    N, C, H, W = x_nchw.shape
    x = x_nchw.reshape(N, C, H * W)
    h1 = jnp.maximum(jnp.einsum('oc,ncm->nom', w1, x) + b1[None], 0.0)
    h2 = jnp.maximum(jnp.einsum('oc,ncm->nom', w2, h1) + b2[None], 0.0)
    y = jax.nn.sigmoid(jnp.einsum('oc,ncm->nom', w3, h2) + b3[None])
    return y.reshape(N, -1, H, W)


if __name__ == "__main__":
    # Small shapes consistent with the module defaults: batch=2,
    # in_channels=32, spatial 16x16 (H*W = 256 = one lane-dense tile).
    key = jax.random.PRNGKey(0)
    k_x, k_p = jax.random.split(key)

    N, C_IN, H, W = 2, 32, 16, 16
    x = jax.random.normal(k_x, (N, C_IN, H, W), jnp.float32)
    params = init_params(k_p, C_IN)

    fwd = jax.jit(functools.partial(acrnet_forward, tile_m=4096))
    iou = fwd(x, params)
    jax.block_until_ready(iou)

    # Correctness check against pure-JAX f32 reference (bf16 matmul operands
    # in the kernel -> relaxed tolerances).
    ref = reference_forward(x, params)
    assert iou.shape == (N, 1, H, W)
    assert jnp.all(jnp.isfinite(iou))
    assert jnp.allclose(iou, ref, atol=2e-2, rtol=2e-2)

    print("KERNEL_OK")
</pallas_src>

<mosaic_0001>
module attributes {stable_mosaic.version = 11 : i64} {
  func.func @acrnet_kernel(%arg0: i32, %arg1: i32, %arg2: memref<1x32x256xf32, #tpu.memory_space<vmem>>, %arg3: memref<256x32xbf16, #tpu.memory_space<vmem>>, %arg4: memref<256x1xf32, #tpu.memory_space<vmem>>, %arg5: memref<256x256xbf16, #tpu.memory_space<vmem>>, %arg6: memref<256x1xf32, #tpu.memory_space<vmem>>, %arg7: memref<256x1xf32, #tpu.memory_space<vmem>>, %arg8: memref<1x1xf32, #tpu.memory_space<vmem>>, %arg9: memref<1x1x256xf32, #tpu.memory_space<vmem>>) attributes {dimension_semantics = [#tpu.dimension_semantics<parallel>, #tpu.dimension_semantics<parallel>], iteration_bounds = array<i64: 2, 1>, scalar_prefetch = 0 : i64, scratch_operands = 0 : i64, tpu.core_type = #tpu.core_type<tc>, window_params = [{transform_indices = @transform_0, window_bounds = array<i64: 1, 32, 256>}, {pipeline_mode = #tpu.pipeline_mode<synchronous>, transform_indices = @transform_1, window_bounds = array<i64: 256, 32>}, {pipeline_mode = #tpu.pipeline_mode<synchronous>, transform_indices = @transform_2, window_bounds = array<i64: 256, 1>}, {pipeline_mode = #tpu.pipeline_mode<synchronous>, transform_indices = @transform_3, window_bounds = array<i64: 256, 256>}, {pipeline_mode = #tpu.pipeline_mode<synchronous>, transform_indices = @transform_4, window_bounds = array<i64: 256, 1>}, {pipeline_mode = #tpu.pipeline_mode<synchronous>, transform_indices = @transform_5, window_bounds = array<i64: 256, 1>}, {pipeline_mode = #tpu.pipeline_mode<synchronous>, transform_indices = @transform_6, window_bounds = array<i64: 1, 1>}, {transform_indices = @transform_7, window_bounds = array<i64: 1, 1, 256>}]} {
    %c0 = arith.constant 0 : index
    %c0_0 = arith.constant 0 : index
    %c0_1 = arith.constant 0 : index
    %0 = vector.load %arg2[%c0, %c0_0, %c0_1] : memref<1x32x256xf32, #tpu.memory_space<vmem>>, vector<1x32x256xf32>
    %1 = vector.shape_cast %0 : vector<1x32x256xf32> to vector<32x256xf32>
    %2 = arith.truncf %1 : vector<32x256xf32> to vector<32x256xbf16>
    %c0_2 = arith.constant 0 : index
    %c0_3 = arith.constant 0 : index
    %3 = vector.load %arg3[%c0_2, %c0_3] : memref<256x32xbf16, #tpu.memory_space<vmem>>, vector<256x32xbf16>
    %cst = arith.constant dense<0.000000e+00> : vector<256x256xf32>
    %4 = tpu.matmul %3, %2, %cst {dimension_numbers = #tpu.dot_dimension_numbers<[1], [0], [0], [1], [0, 0, 1, 1], [], []>} : vector<256x32xbf16>, vector<32x256xbf16>, vector<256x256xf32> -> vector<256x256xf32>
    %c0_4 = arith.constant 0 : index
    %c0_5 = arith.constant 0 : index
    %5 = vector.load %arg4[%c0_4, %c0_5] : memref<256x1xf32, #tpu.memory_space<vmem>>, vector<256x1xf32>
    %6 = vector.broadcast %5 : vector<256x1xf32> to vector<256x256xf32>
    %7 = arith.addf %4, %6 : vector<256x256xf32>
    %cst_6 = arith.constant 0.000000e+00 : f32
    %8 = vector.broadcast %cst_6 : f32 to vector<256x256xf32>
    %9 = arith.maximumf %7, %8 : vector<256x256xf32>
    %10 = arith.truncf %9 : vector<256x256xf32> to vector<256x256xbf16>
    %c0_7 = arith.constant 0 : index
    %c0_8 = arith.constant 0 : index
    %11 = vector.load %arg5[%c0_7, %c0_8] : memref<256x256xbf16, #tpu.memory_space<vmem>>, vector<256x256xbf16>
    %cst_9 = arith.constant dense<0.000000e+00> : vector<256x256xf32>
    %12 = tpu.matmul %11, %10, %cst_9 {dimension_numbers = #tpu.dot_dimension_numbers<[1], [0], [0], [1], [0, 0, 1, 1], [], []>} : vector<256x256xbf16>, vector<256x256xbf16>, vector<256x256xf32> -> vector<256x256xf32>
    %c0_10 = arith.constant 0 : index
    %c0_11 = arith.constant 0 : index
    %13 = vector.load %arg6[%c0_10, %c0_11] : memref<256x1xf32, #tpu.memory_space<vmem>>, vector<256x1xf32>
    %14 = vector.broadcast %13 : vector<256x1xf32> to vector<256x256xf32>
    %15 = arith.addf %12, %14 : vector<256x256xf32>
    %cst_12 = arith.constant 0.000000e+00 : f32
    %16 = vector.broadcast %cst_12 : f32 to vector<256x256xf32>
    %17 = arith.maximumf %15, %16 : vector<256x256xf32>
    %18 = arith.truncf %17 : vector<256x256xf32> to vector<256x256xbf16>
    %19 = arith.extf %18 : vector<256x256xbf16> to vector<256x256xf32>
    %c0_13 = arith.constant 0 : index
    %c0_14 = arith.constant 0 : index
    %20 = vector.load %arg7[%c0_13, %c0_14] : memref<256x1xf32, #tpu.memory_space<vmem>>, vector<256x1xf32>
    %21 = vector.broadcast %20 : vector<256x1xf32> to vector<256x256xf32>
    %22 = arith.mulf %19, %21 : vector<256x256xf32>
    %cst_15 = arith.constant dense<0.000000e+00> : vector<256xf32>
    %23 = vector.multi_reduction <add>, %22, %cst_15 [0] : vector<256x256xf32> to vector<256xf32>
    %24 = vector.shape_cast %23 : vector<256xf32> to vector<1x256xf32>
    %c0_16 = arith.constant 0 : index
    %c0_17 = arith.constant 0 : index
    %25 = vector.load %arg8[%c0_16, %c0_17] : memref<1x1xf32, #tpu.memory_space<vmem>>, vector<1x1xf32>
    %26 = vector.broadcast %25 : vector<1x1xf32> to vector<1x256xf32>
    %27 = arith.addf %24, %26 : vector<1x256xf32>
    %28 = arith.negf %27 : vector<1x256xf32>
    %29 = math.exp %28 : vector<1x256xf32>
    %cst_18 = arith.constant 1.000000e+00 : f32
    %30 = vector.broadcast %cst_18 : f32 to vector<1x256xf32>
    %31 = arith.addf %30, %29 : vector<1x256xf32>
    %32 = arith.divf %30, %31 : vector<1x256xf32>
    %c0_19 = arith.constant 0 : index
    %c0_20 = arith.constant 0 : index
    %c0_21 = arith.constant 0 : index
    %33 = vector.load %arg9[%c0_19, %c0_20, %c0_21] : memref<1x1x256xf32, #tpu.memory_space<vmem>>, vector<1x1x256xf32>
    %34 = vector.shape_cast %33 : vector<1x1x256xf32> to vector<1x256xf32>
    %35 = vector.shape_cast %32 : vector<1x256xf32> to vector<1x1x256xf32>
    tpu.vector_store %arg9[%c0_19, %c0_20, %c0_21], %35 {strides = array<i32>} : memref<1x1x256xf32, #tpu.memory_space<vmem>>, vector<1x1x256xf32>,
    return
  }
  func.func @transform_0(%arg0: i32, %arg1: i32) -> (i32, i32, i32) {
    %c0_i32 = arith.constant 0 : i32
    %c0_i32_0 = arith.constant 0 : i32
    return %arg0, %c0_i32, %arg1 : i32, i32, i32
  }
  func.func @transform_1(%arg0: i32, %arg1: i32) -> (i32, i32) {
    %c0_i32 = arith.constant 0 : i32
    %c0_i32_0 = arith.constant 0 : i32
    %c0_i32_1 = arith.constant 0 : i32
    return %c0_i32, %c0_i32_0 : i32, i32
  }
  func.func @transform_2(%arg0: i32, %arg1: i32) -> (i32, i32) {
    %c0_i32 = arith.constant 0 : i32
    %c0_i32_0 = arith.constant 0 : i32
    %c0_i32_1 = arith.constant 0 : i32
    return %c0_i32, %c0_i32_0 : i32, i32
  }
  func.func @transform_3(%arg0: i32, %arg1: i32) -> (i32, i32) {
    %c0_i32 = arith.constant 0 : i32
    %c0_i32_0 = arith.constant 0 : i32
    %c0_i32_1 = arith.constant 0 : i32
    return %c0_i32, %c0_i32_0 : i32, i32
  }
  func.func @transform_4(%arg0: i32, %arg1: i32) -> (i32, i32) {
    %c0_i32 = arith.constant 0 : i32
    %c0_i32_0 = arith.constant 0 : i32
    %c0_i32_1 = arith.constant 0 : i32
    return %c0_i32, %c0_i32_0 : i32, i32
  }
  func.func @transform_5(%arg0: i32, %arg1: i32) -> (i32, i32) {
    %c0_i32 = arith.constant 0 : i32
    %c0_i32_0 = arith.constant 0 : i32
    %c0_i32_1 = arith.constant 0 : i32
    return %c0_i32, %c0_i32_0 : i32, i32
  }
  func.func @transform_6(%arg0: i32, %arg1: i32) -> (i32, i32) {
    %c0_i32 = arith.constant 0 : i32
    %c0_i32_0 = arith.constant 0 : i32
    %c0_i32_1 = arith.constant 0 : i32
    return %c0_i32, %c0_i32_0 : i32, i32
  }
  func.func @transform_7(%arg0: i32, %arg1: i32) -> (i32, i32, i32) {
    %c0_i32 = arith.constant 0 : i32
    %c0_i32_0 = arith.constant 0 : i32
    return %arg0, %c0_i32, %arg1 : i32, i32, i32
  }
}

</mosaic_0001>

<bundles_post_ra>
// kernel: acrnet_forward.1
= control target key start
LH: loop header
LB: loop body
LE: loop exit
PB: predicated region body
PF: predicated region fallthrough
CT: control target
= control target key end

     0   :  { %s2446_s26 = smov 0   ;;  %s2448_s27 = smov 0   ;;  %s3346_s0 = inlined_call_operand.vmem [shape: f32[2,32,256], index: 0, kind: input, shape index: {}]   ;;  %s3347_s1 = inlined_call_operand.vmem [shape: bf16[256,32], index: 1, kind: input, shape index: {}]   ;;  %s3348_s2 = inlined_call_operand.vmem [shape: f32[256,1], index: 2, kind: input, shape index: {}]   ;;  %s3349_s3 = inlined_call_operand.vmem [shape: bf16[256,256], index: 3, kind: input, shape index: {}]   ;;  %s3350_s4 = inlined_call_operand.vmem [shape: f32[256,1], index: 4, kind: input, shape index: {}]   ;;  %s3351_s5 = inlined_call_operand.vmem [shape: f32[256,1], index: 5, kind: input, shape index: {}]   ;;  %s3352_s6 = inlined_call_operand.<no memory space> [shape: f32[1,1], index: 6, kind: input, shape index: {}]   ;;  %s3353_s7 = inlined_call_operand.vmem [shape: f32[2,1,256], index: 7, kind: output, shape index: {}]  }
   0x1   :  { %v12_v0 = vstv %s3352_s6  ;;  %s2450_s28 = smov 0  }
   0x2   :  { %13 = vst [vmem:[#allocation2] sm:$0x1] %v12_v0 }
   0x3 LB: > { %s31_s6 = sadd.s32 1, %s2395_s27  ;;  %p2172_p0 = scmp.ge.s32.totalorder %s2399_s28, 1  ;;  %s2399_s28 = sphi %s2450_s28, %s19_s28   ;;  %s2395_s27 = sphi %s2448_s27, %s3376_s27   ;;  %s2391_s26 = sphi %s2446_s26, %s3375_s26  }
   0x4   : > { %p33_p1 = scmp.ge.s32.totalorder %s31_s6, 2  ;;  %p260_p2 = scmp.lt.s32.totalorder %s2399_s28, 3 }
   0x6   : > { %s3378_s6 = smov (%p33_p1, %s31_s6), 0  ;;  %p261_p3 = pnand %p2172_p0, %p260_p2 }
   0x8   : > { %264 = sbr.rel (%p261_p3) target bundleno = 748 (0x2ec), region = 48 }
   0xd   : > { %v377_v1 = vld [vmem:[%s3348_s2 + $0x70] sm:$0xff]  ;;  %v375_v2 = vld [vmem:[%s3348_s2 + $0x60] sm:$0xff]  ;;  %p300_p4 = scmp.lt.s32.totalorder %s2391_s26, 1  ;;  %v2401_v3 = vmov 0   ;;  %v378_v4 = vld [vmem:[%s3348_s2 + $0x78] sm:$0xff]  ;;  %vm635_vm0 = vcmask 261120  }
   0xe   : > { %2304 = vset.pattern.permute.xlu1 %v2401_v3  ;;  %2303 = vset.pattern.permute.xlu0 %v2401_v3  ;;  %v376_v5 = vld [vmem:[%s3348_s2 + $0x68] sm:$0xff]  ;;  %v374_v6 = vld [vmem:[%s3348_s2 + $0x58] sm:$0xff]  ;;  %v373_v7 = vld [vmem:[%s3348_s2 + $0x50] sm:$0xff] }
   0xf   : > { %467 = vperm.xlu0 %2303, %v377_v1   ;;  %457 = vperm.xlu1 %2304, %v375_v2   ;;  %s3380_s26 = smov (!%p300_p4, %s2391_s26), 1  ;;  %v372_v19 = vld [vmem:[%s3348_s2 + $0x48] sm:$0xff]  ;;  %v371_v20 = vld [vmem:[%s3348_s2 + $0x40] sm:$0xff]  ;;  %v370_v23 = vld [vmem:[%s3348_s2 + $0x38] sm:$0xff] }
  0x10   : > { %716 = vmatprep.mubr.bf16.mxu0 %v2401_v3  ;;  %s2244_s14 = sshll.u32 %s3380_s26, 6  ;;  %v2305_v22 = vld [vmem:[%s3347_s1] sm:$0xff]   ;;  %v369_v24 = vld [vmem:[%s3348_s2 + $0x30] sm:$0xff]  ;;  %v368_v25 = vld [vmem:[%s3348_s2 + $0x28] sm:$0xff]  ;;  %s2175_s18 = sshll.u32 %s3380_s26, 1 }
  0x11   : > { %s307_s17 = scalar_lea.vmem %s3346_s0, %s2244_s14  ;;  %v367_v26 = vld [vmem:[%s3348_s2 + $0x20] sm:$0xff]  ;;  %v2306_v27 = vld [vmem:[%s3347_s1 + $0x8] sm:$0xff]   ;;  %v366_v28 = vld [vmem:[%s3348_s2 + $0x18] sm:$0xff]  ;;  %s316_s21 = scalar_lea.vmem %s3353_s7, %s2175_s18 }
  0x12   : > { %v324_v8 = vld [vmem:[%s307_s17 + $0x28] sm:$0xff]  ;;  %v326_v9 = vld [vmem:[%s307_s17 + $0x38] sm:$0xff]  ;;  %v323_v10 = vld [vmem:[%s307_s17 + $0x20] sm:$0xff] }
  0x13   : > { %472 = vperm.xlu0 %2303, %v378_v4   ;;  %462 = vperm.xlu1 %2304, %v376_v5   ;;  %v330_v11 = vpack.c.bf16 %v326_v9, %v324_v8  ;;  %v325_v12 = vld [vmem:[%s307_s17 + $0x30] sm:$0xff]  ;;  %v320_v13 = vld [vmem:[%s307_s17 + $0x8] sm:$0xff]  ;;  %v322_v14 = vld [vmem:[%s307_s17 + $0x18] sm:$0xff] }
  0x14   : > { %v329_v15 = vpack.c.bf16 %v325_v12, %v323_v10  ;;  %v328_v16 = vpack.c.bf16 %v322_v14, %v320_v13  ;;  %v319_v17 = vld [vmem:[%s307_s17] sm:$0xff]  ;;  %v321_v18 = vld [vmem:[%s307_s17 + $0x10] sm:$0xff]  ;;  %v364_v30 = vld [vmem:[%s3348_s2 + $0x8] sm:$0xff] }
  0x15   : > { %696 = vmatprep.subr.bf16.mxu0 %v330_v11  ;;  %v327_v21 = vpack.c.bf16 %v321_v18, %v319_v17  ;;  %v365_v29 = vld [vmem:[%s3348_s2 + $0x10] sm:$0xff]  ;;  %v363_v31 = vld [vmem:[%s3348_s2] sm:$0xff]  ;;  %v394_v33 = vld [vmem:[%s3348_s2 + $0xf8] sm:$0xff] }
  0x16   : > { %697 = vmatpush1.bf16.msra.mxu0 %v329_v15  ;;  %v2307_v32 = vld [vmem:[%s3347_s1 + $0x10] sm:$0xff]   ;;  %v392_v35 = vld [vmem:[%s3348_s2 + $0xe8] sm:$0xff]  ;;  %v391_v36 = vld [vmem:[%s3348_s2 + $0xe0] sm:$0xff] }
  0x17   : > { %452 = vperm.xlu1 %2304, %v374_v6   ;;  %447 = vperm.xlu0 %2303, %v373_v7   ;;  %v393_v34 = vld [vmem:[%s3348_s2 + $0xf0] sm:$0xff]  ;;  %v2308_v37 = vld [vmem:[%s3347_s1 + $0x18] sm:$0xff]   ;;  %v388_v40 = vld [vmem:[%s3348_s2 + $0xc8] sm:$0xff] }
  0x18   : > { %698 = vmatprep.subr.bf16.mxu0 %v328_v16  ;;  %v390_v38 = vld [vmem:[%s3348_s2 + $0xd8] sm:$0xff]  ;;  %v389_v39 = vld [vmem:[%s3348_s2 + $0xd0] sm:$0xff]  ;;  %v387_v41 = vld [vmem:[%s3348_s2 + $0xc0] sm:$0xff] }
  0x19   : > { %v2309_v42 = vld [vmem:[%s3347_s1 + $0x20] sm:$0xff]   ;;  %v386_v43 = vld [vmem:[%s3348_s2 + $0xb8] sm:$0xff]  ;;  %v385_v44 = vld [vmem:[%s3348_s2 + $0xb0] sm:$0xff] }
  0x1a   : > { %699 = vmatpush1.bf16.msra.mxu0 %v327_v21  ;;  %v384_v45 = vld [vmem:[%s3348_s2 + $0xa8] sm:$0xff]  ;;  %v383_v46 = vld [vmem:[%s3348_s2 + $0xa0] sm:$0xff]  ;;  %v382_v48 = vld [vmem:[%s3348_s2 + $0x98] sm:$0xff] }
  0x1b   : > { %442 = vperm.xlu1 %2304, %v372_v19   ;;  %437 = vperm.xlu0 %2303, %v371_v20   ;;  %v2310_v47 = vld [vmem:[%s3347_s1 + $0x28] sm:$0xff]   ;;  %v381_v49 = vld [vmem:[%s3348_s2 + $0x90] sm:$0xff]  ;;  %v379_v51 = vld [vmem:[%s3348_s2 + $0x80] sm:$0xff] }
  0x1c   : > { %v380_v50 = vld [vmem:[%s3348_s2 + $0x88] sm:$0xff]  ;;  %v2311_v52 = vld [vmem:[%s3347_s1 + $0x30] sm:$0xff]   ;;  %v1005_v54 = vld [vmem:[%s3350_s4] sm:$0xff] }
  0x1d   : > { %2192 = vmatmul.mubr.msk.bf16.vlgmr.msra.gmra.mxu0 %vm635_vm0, %v2305_v22  ;;  %v1006_v53 = vld [vmem:[%s3350_s4 + $0x8] sm:$0xff]  ;;  %v1008_v55 = vld [vmem:[%s3350_s4 + $0x18] sm:$0xff]  ;;  %v1007_v56 = vld [vmem:[%s3350_s4 + $0x10] sm:$0xff] }
  0x1e   : > { %726 = vmatprep.mubr.bf16.mxu0 %v2401_v3  ;;  %v2312_v57 = vld [vmem:[%s3347_s1 + $0x38] sm:$0xff]   ;;  %v1010_v58 = vld [vmem:[%s3350_s4 + $0x28] sm:$0xff]  ;;  %v1009_v59 = vld [vmem:[%s3350_s4 + $0x20] sm:$0xff] }
  0x1f   : > { %432 = vperm.xlu1 %2304, %v370_v23   ;;  %427 = vperm.xlu0 %2303, %v369_v24   ;;  %v1012_v60 = vld [vmem:[%s3350_s4 + $0x38] sm:$0xff]  ;;  %v1011_v61 = vld [vmem:[%s3350_s4 + $0x30] sm:$0xff]  ;;  %v2313_v62 = vld [vmem:[%s3347_s1 + $0x40] sm:$0xff]  }
  0x20   : > { %v1014_v63 = vld [vmem:[%s3350_s4 + $0x48] sm:$0xff]  ;;  %v1013_v0 = vld [vmem:[%s3350_s4 + $0x40] sm:$0xff]  ;;  %v1016_v1 = vld [vmem:[%s3350_s4 + $0x58] sm:$0xff] }
  0x21   : > { %v1015_v2 = vld [vmem:[%s3350_s4 + $0x50] sm:$0xff]  ;;  %v2314_v4 = vld [vmem:[%s3347_s1 + $0x48] sm:$0xff]   ;;  %v1017_v6 = vld [vmem:[%s3350_s4 + $0x60] sm:$0xff] }
  0x22   : > { %v1018_v5 = vld [vmem:[%s3350_s4 + $0x68] sm:$0xff]  ;;  %v1020_v7 = vld [vmem:[%s3350_s4 + $0x78] sm:$0xff]  ;;  %v1019_v8 = vld [vmem:[%s3350_s4 + $0x70] sm:$0xff] }
  0x23   : > { %422 = vperm.xlu1 %2304, %v368_v25   ;;  %417 = vperm.xlu0 %2303, %v367_v26   ;;  %v2315_v9 = vld [vmem:[%s3347_s1 + $0x50] sm:$0xff]   ;;  %v1022_v10 = vld [vmem:[%s3350_s4 + $0x88] sm:$0xff]  ;;  %v1021_v11 = vld [vmem:[%s3350_s4 + $0x80] sm:$0xff] }
  0x24   : > { %v1024_v12 = vld [vmem:[%s3350_s4 + $0x98] sm:$0xff]  ;;  %v1023_v13 = vld [vmem:[%s3350_s4 + $0x90] sm:$0xff]  ;;  %v1710_v15 = vld [vmem:[%s3351_s5] sm:$0xff] }
  0x25   : > { %2193 = vmatmul.mubr.msk.bf16.gmra.mxu0 %vm635_vm0, %v2306_v27  ;;  %v2316_v14 = vld [vmem:[%s3347_s1 + $0x58] sm:$0xff]   ;;  %v1025_v16 = vld [vmem:[%s3350_s4 + $0xa0] sm:$0xff]  ;;  %v1712_v17 = vld [vmem:[%s3351_s5 + $0x10] sm:$0xff] }
  0x26   : > { %736 = vmatprep.mubr.bf16.mxu0 %v2401_v3  ;;  %v1711_v18 = vld [vmem:[%s3351_s5 + $0x8] sm:$0xff]  ;;  %v2317_v19 = vld [vmem:[%s3347_s1 + $0x60] sm:$0xff]   ;;  %v1713_v21 = vld [vmem:[%s3351_s5 + $0x18] sm:$0xff] }
  0x27   : > { %412 = vperm.xlu1 %2304, %v366_v28   ;;  %407 = vperm.xlu0 %2303, %v365_v29   ;;  %v1714_v20 = vld [vmem:[%s3351_s5 + $0x20] sm:$0xff]  ;;  %v1716_v22 = vld [vmem:[%s3351_s5 + $0x30] sm:$0xff]  ;;  %v1715_v23 = vld [vmem:[%s3351_s5 + $0x28] sm:$0xff] }
  0x28   : > { %v2318_v24 = vld [vmem:[%s3347_s1 + $0x68] sm:$0xff]   ;;  %v1718_v25 = vld [vmem:[%s3351_s5 + $0x40] sm:$0xff]  ;;  %v1717_v26 = vld [vmem:[%s3351_s5 + $0x38] sm:$0xff] }
  0x29   : > { %v1720_v27 = vld [vmem:[%s3351_s5 + $0x50] sm:$0xff]  ;;  %v1719_v28 = vld [vmem:[%s3351_s5 + $0x48] sm:$0xff] }
  0x2a   : > { %v2319_v29 = vld [vmem:[%s3347_s1 + $0x70] sm:$0xff]  }
  0x2b   : > { %402 = vperm.xlu1 %2304, %v364_v30   ;;  %397 = vperm.xlu0 %2303, %v363_v31   ;;  %v1722_v30 = vld [vmem:[%s3351_s5 + $0x60] sm:$0xff]  ;;  %v1721_v31 = vld [vmem:[%s3351_s5 + $0x58] sm:$0xff] }
  0x2d   : > { %2194 = vmatmul.mubr.msk.bf16.gmra.mxu0 %vm635_vm0, %v2307_v32  ;;  %v1724_v32 = vld [vmem:[%s3351_s5 + $0x70] sm:$0xff] }
  0x2e   : > { %746 = vmatprep.mubr.bf16.mxu0 %v2401_v3 }
  0x2f   : > { %552 = vperm.xlu1 %2304, %v394_v33   ;;  %547 = vperm.xlu0 %2303, %v393_v34   ;;  %v1723_v33 = vld [vmem:[%s3351_s5 + $0x68] sm:$0xff]  ;;  %v2320_v34 = vld [vmem:[%s3347_s1 + $0x78] sm:$0xff]  }
  0x33   : > { %542 = vperm.xlu1 %2304, %v392_v35   ;;  %537 = vperm.xlu0 %2303, %v391_v36   ;;  %v1026_v35 = vld [vmem:[%s3350_s4 + $0xa8] sm:$0xff]  ;;  %v1725_v36 = vld [vmem:[%s3351_s5 + $0x78] sm:$0xff] }
  0x35   : > { %2195 = vmatmul.mubr.msk.bf16.gmra.mxu0 %vm635_vm0, %v2308_v37  ;;  %v1726_v37 = vld [vmem:[%s3351_s5 + $0x80] sm:$0xff] }
  0x36   : > { %756 = vmatprep.mubr.bf16.mxu0 %v2401_v3 }
  0x37   : > { %532 = vperm.xlu1 %2304, %v390_v38   ;;  %527 = vperm.xlu0 %2303, %v389_v39   ;;  %v1028_v38 = vld [vmem:[%s3350_s4 + $0xb8] sm:$0xff]  ;;  %v1027_v39 = vld [vmem:[%s3350_s4 + $0xb0] sm:$0xff] }
  0x3b   : > { %522 = vperm.xlu1 %2304, %v388_v40   ;;  %517 = vperm.xlu0 %2303, %v387_v41   ;;  %v1729_v40 = vld [vmem:[%s3351_s5 + $0x98] sm:$0xff]  ;;  %v1728_v41 = vld [vmem:[%s3351_s5 + $0x90] sm:$0xff] }
  0x3d   : > { %2196 = vmatmul.mubr.msk.bf16.gmra.mxu0 %vm635_vm0, %v2309_v42  ;;  %v1030_v42 = vld [vmem:[%s3350_s4 + $0xc8] sm:$0xff] }
  0x3e   : > { %766 = vmatprep.mubr.bf16.mxu0 %v2401_v3 }
  0x3f   : > { %512 = vperm.xlu1 %2304, %v386_v43   ;;  %507 = vperm.xlu0 %2303, %v385_v44   ;;  %v1029_v43 = vld [vmem:[%s3350_s4 + $0xc0] sm:$0xff]  ;;  %v1731_v44 = vld [vmem:[%s3351_s5 + $0xa8] sm:$0xff] }
  0x43   : > { %502 = vperm.xlu1 %2304, %v384_v45   ;;  %497 = vperm.xlu0 %2303, %v383_v46   ;;  %v1730_v45 = vld [vmem:[%s3351_s5 + $0xa0] sm:$0xff]  ;;  %v1032_v46 = vld [vmem:[%s3350_s4 + $0xd8] sm:$0xff] }
  0x45   : > { %2197 = vmatmul.mubr.msk.bf16.gmra.mxu0 %vm635_vm0, %v2310_v47  ;;  %v1031_v47 = vld [vmem:[%s3350_s4 + $0xd0] sm:$0xff] }
  0x46   : > { %776 = vmatprep.mubr.bf16.mxu0 %v2401_v3 }
  0x47   : > { %492 = vperm.xlu1 %2304, %v382_v48   ;;  %487 = vperm.xlu0 %2303, %v381_v49   ;;  %v1733_v48 = vld [vmem:[%s3351_s5 + $0xb8] sm:$0xff]  ;;  %v1732_v49 = vld [vmem:[%s3351_s5 + $0xb0] sm:$0xff] }
  0x4b   : > { %482 = vperm.xlu1 %2304, %v380_v50   ;;  %477 = vperm.xlu0 %2303, %v379_v51   ;;  %v1034_v50 = vld [vmem:[%s3350_s4 + $0xe8] sm:$0xff]  ;;  %v1033_v51 = vld [vmem:[%s3350_s4 + $0xe0] sm:$0xff] }
  0x4d   : > { %2198 = vmatmul.mubr.msk.bf16.gmra.mxu0 %vm635_vm0, %v2311_v52 }
  0x4e   : > { %786 = vmatprep.mubr.bf16.mxu0 %v2401_v3 }
  0x4f   : > { %1044 = vperm.xlu1 %2304, %v1006_v53   ;;  %1039 = vperm.xlu0 %2303, %v1005_v54   ;;  %v1735_v53 = vld [vmem:[%s3351_s5 + $0xc8] sm:$0xff] }
  0x53   : > { %1054 = vperm.xlu1 %2304, %v1008_v55   ;;  %1049 = vperm.xlu0 %2303, %v1007_v56   ;;  %v1734_v55 = vld [vmem:[%s3351_s5 + $0xc0] sm:$0xff]  ;;  %v1036_v56 = vld [vmem:[%s3350_s4 + $0xf8] sm:$0xff] }
  0x55   : > { %2199 = vmatmul.mubr.msk.bf16.gmra.mxu0 %vm635_vm0, %v2312_v57 }
  0x56   : > { %796 = vmatprep.mubr.bf16.mxu0 %v2401_v3 }
  0x57   : > { %1064 = vperm.xlu1 %2304, %v1010_v58   ;;  %1059 = vperm.xlu0 %2303, %v1009_v59   ;;  %v1035_v58 = vld [vmem:[%s3350_s4 + $0xf0] sm:$0xff] }
  0x5b   : > { %1074 = vperm.xlu1 %2304, %v1012_v60   ;;  %1069 = vperm.xlu0 %2303, %v1011_v61   ;;  %v1737_v60 = vld [vmem:[%s3351_s5 + $0xd8] sm:$0xff]  ;;  %v1736_v61 = vld [vmem:[%s3351_s5 + $0xd0] sm:$0xff] }
  0x5d   : > { %2200 = vmatmul.mubr.msk.bf16.gmra.mxu0 %vm635_vm0, %v2313_v62 }
  0x5e   : > { %806 = vmatprep.mubr.bf16.mxu0 %v2401_v3 }
  0x5f   : > { %1084 = vperm.xlu1 %2304, %v1014_v63   ;;  %1079 = vperm.xlu0 %2303, %v1013_v0   ;;  %v1739_v63 = vld [vmem:[%s3351_s5 + $0xe8] sm:$0xff] }
  0x63   : > { %1094 = vperm.xlu1 %2304, %v1016_v1   ;;  %1089 = vperm.xlu0 %2303, %v1015_v2   ;;  %v1738_v1 = vld [vmem:[%s3351_s5 + $0xe0] sm:$0xff]  ;;  %v1741_v2 = vld [vmem:[%s3351_s5 + $0xf8] sm:$0xff] }
  0x65   : > { %2201 = vmatmul.mubr.msk.bf16.gmra.mxu0 %vm635_vm0, %v2314_v4 }
  0x66   : > { %816 = vmatprep.mubr.bf16.mxu0 %v2401_v3 }
  0x67   : > { %1104 = vperm.xlu1 %2304, %v1018_v5   ;;  %1099 = vperm.xlu0 %2303, %v1017_v6   ;;  %v1740_v5 = vld [vmem:[%s3351_s5 + $0xf0] sm:$0xff] }
  0x6b   : > { %1114 = vperm.xlu1 %2304, %v1020_v7   ;;  %1109 = vperm.xlu0 %2303, %v1019_v8   ;;  %v2040_v7 = vld [vmem:[#allocation2] sm:$0x1] }
  0x6d   : > { %2202 = vmatmul.mubr.msk.bf16.gmra.mxu0 %vm635_vm0, %v2315_v9 }
  0x6e   : > { %826 = vmatprep.mubr.bf16.mxu0 %v2401_v3 }
  0x6f   : > { %1124 = vperm.xlu1 %2304, %v1022_v10   ;;  %1119 = vperm.xlu0 %2303, %v1021_v11  }
  0x73   : > { %1134 = vperm.xlu1 %2304, %v1024_v12   ;;  %1129 = vperm.xlu0 %2303, %v1023_v13  }
  0x75   : > { %2203 = vmatmul.mubr.msk.bf16.gmra.mxu0 %vm635_vm0, %v2316_v14 }
  0x76   : > { %836 = vmatprep.mubr.bf16.mxu0 %v2401_v3 }
  0x77   : > { %1744 = vperm.xlu1 %2304, %v1710_v15   ;;  %1139 = vperm.xlu0 %2303, %v1025_v16  }
  0x7b   : > { %1754 = vperm.xlu1 %2304, %v1712_v17   ;;  %1749 = vperm.xlu0 %2303, %v1711_v18  }
  0x7d   : > { %2204 = vmatmul.mubr.msk.bf16.gmra.mxu0 %vm635_vm0, %v2317_v19 }
  0x7e   : > { %846 = vmatprep.mubr.bf16.mxu0 %v2401_v3 }
  0x7f   : > { %1764 = vperm.xlu1 %2304, %v1714_v20   ;;  %1759 = vperm.xlu0 %2303, %v1713_v21  }
  0x83   : > { %1774 = vperm.xlu1 %2304, %v1716_v22   ;;  %1769 = vperm.xlu0 %2303, %v1715_v23  }
  0x85   : > { %2205 = vmatmul.mubr.msk.bf16.gmra.mxu0 %vm635_vm0, %v2318_v24 }
  0x86   : > { %856 = vmatprep.mubr.bf16.mxu0 %v2401_v3 }
  0x87   : > { %1784 = vperm.xlu1 %2304, %v1718_v25   ;;  %1779 = vperm.xlu0 %2303, %v1717_v26  }
  0x8a   : > { %v2810_v52 = vpop.permute.xlu0 %467  ;;  %v2815_v54 = vpop.permute.xlu1 %457 }
  0x8b   : > { %1794 = vperm.xlu1 %2304, %v1720_v27   ;;  %1789 = vperm.xlu0 %2303, %v1719_v28  }
  0x8d   : > { %2206 = vmatmul.mubr.msk.bf16.gmra.mxu0 %vm635_vm0, %v2319_v29 }
  0x8e   : > { %866 = vmatprep.mubr.bf16.mxu0 %v2401_v3  ;;  %v1727_v3 = vld [vmem:[%s3351_s5 + $0x88] sm:$0xff]  ;;  %v2823_v57 = vpop.permute.xlu0 %472  ;;  %v2828_v59 = vpop.permute.xlu1 %462 }
  0x8f   : > { %1804 = vperm.xlu1 %2304, %v1722_v30   ;;  %1799 = vperm.xlu0 %2303, %v1721_v31  }
  0x92   : > { %v2836_v62 = vpop.permute.xlu0 %447  ;;  %v2841_v0 = vpop.permute.xlu1 %452 }
  0x93   : > { %1814 = vperm.xlu1 %2304, %v1724_v32   ;;  %1809 = vperm.xlu0 %2303, %v1723_v33  }
  0x95   : > { %2207 = vmatmul.mubr.msk.bf16.gmra.mxu0 %vm635_vm0, %v2320_v34 }
  0x96   : > { %v2849_v4 = vpop.permute.xlu0 %437  ;;  %v2854_v6 = vpop.permute.xlu1 %442 }
  0x97   : > { %1144 = vperm.xlu1 %2304, %v1026_v35   ;;  %1819 = vperm.xlu0 %2303, %v1725_v36  }
  0x9a   : > { %v2856_v8 = vpop.permute.xlu0 %427  ;;  %v2858_v9 = vpop.permute.xlu1 %432 }
  0x9b   : > { %1829 = vperm.xlu1 %2304, %v1727_v3   ;;  %1824 = vperm.xlu0 %2303, %v1726_v37  }
  0x9e   : > { %v2860_v10 = vpop.permute.xlu0 %417  ;;  %v2862_v11 = vpop.permute.xlu1 %422 }
  0x9f   : > { %1154 = vperm.xlu1 %2304, %v1028_v38   ;;  %1149 = vperm.xlu0 %2303, %v1027_v39  }
  0xa2   : > { %v408_v12 = vpop.permute.xlu0 %407  ;;  %v413_v13 = vpop.permute.xlu1 %412 }
  0xa3   : > { %1839 = vperm.xlu1 %2304, %v1729_v40   ;;  %1834 = vperm.xlu0 %2303, %v1728_v41  }
  0xa6   : > { %v398_v15 = vpop.permute.xlu0 %397  ;;  %v403_v18 = vpop.permute.xlu1 %402 }
  0xa7   : > { %1164 = vperm.xlu1 %2304, %v1030_v42   ;;  %1159 = vperm.xlu0 %2303, %v1029_v43  }
  0xab   : > { %1849 = vperm.xlu1 %2304, %v1731_v44   ;;  %1844 = vperm.xlu0 %2303, %v1730_v45  }
  0xaf   : > { %1174 = vperm.xlu1 %2304, %v1032_v46   ;;  %1169 = vperm.xlu0 %2303, %v1031_v47   ;;  %v2880_v47 = vpop.permute.xlu0 %547 }
  0xb3   : > { %1859 = vperm.xlu1 %2304, %v1733_v48   ;;  %1854 = vperm.xlu0 %2303, %v1732_v49   ;;  %v2884_v49 = vpop.permute.xlu1 %552 }
  0xb7   : > { %1184 = vperm.xlu1 %2304, %v1034_v50   ;;  %1179 = vperm.xlu0 %2303, %v1033_v51  }
  0xbb   : > { %1869 = vperm.xlu1 %2304, %v1735_v53   ;;  %1864 = vperm.xlu0 %2303, %v1734_v55   ;;  %v2890_v53 = vpop.permute.xlu0 %537 }
  0xbf   : > { %1194 = vperm.xlu1 %2304, %v1036_v56   ;;  %1189 = vperm.xlu0 %2303, %v1035_v58   ;;  %v2894_v56 = vpop.permute.xlu1 %542 }
  0xc3   : > { %1879 = vperm.xlu1 %2304, %v1737_v60   ;;  %1874 = vperm.xlu0 %2303, %v1736_v61   ;;  %v2323_v61 = vld [vmem:[%s3349_s3 + $0x4] ss:$8 sps:$4 sm:$0xff]  }
  0xc4   : > { %1389 = vmatprep.mubr.bf16.mxu0 %v2323_v61 }
  0xc7   : > { %1889 = vperm.xlu1 %2304, %v1739_v63   ;;  %1884 = vperm.xlu0 %2303, %v1738_v1   ;;  %v2326_v63 = vld [vmem:[%s3349_s3 + $0x34] ss:$8 sps:$4 sm:$0xff]   ;;  %v2906_v1 = vpop.permute.xlu0 %527 }
  0xc8   : > { %1419 = vmatprep.mubr.bf16.mxu1 %v2326_v63 }
  0xcb   : > { %1899 = vperm.xlu1 %2304, %v1741_v2   ;;  %1894 = vperm.xlu0 %2303, %v1740_v5   ;;  %v2910_v5 = vpop.permute.xlu1 %532 }
  0xcf   : > { %2043 = vperm.xlu0 %2303, %v2040_v7  }
  0xdd   : > { %v718_v14 = vpop.f32.mrf.mxu0 }
  0xde   : > { %v719_v17 = vadd.f32 %v718_v14, %v398_v15 }
  0xdf   : > { %v720_v16 = vpop.f32.mrf.mxu0 }
  0xe0   : > { %v721_v20 = vadd.f32 %v720_v16, %v398_v15  ;;  %v877_v23 = vmax.f32 %v719_v17, 0.0  ;;  %v2914_v15 = vpop.permute.xlu1 %522 }
  0xe1   : > { %v722_v19 = vpop.f32.mrf.mxu0  ;;  %3362 = vst [vmem:[#allocation4_spill] sm:$0xff] %v2914_v15 }
  0xe2   : > { %v723_v21 = vadd.f32 %v722_v19, %v403_v18  ;;  %v878_v27 = vmax.f32 %v721_v20, 0.0 }
  0xe3   : > { %v724_v22 = vpop.f32.mrf.mxu0 }
  0xe4   : > { %v879_v24 = vmax.f32 %v723_v21, 0.0  ;;  %v725_v25 = vadd.f32 %v724_v22, %v403_v18  ;;  %v2918_v20 = vpop.permute.xlu1 %512 }
  0xe5   : > { %v728_v26 = vpop.f32.mrf.mxu0  ;;  %3364 = vst [vmem:[#allocation6_spill] sm:$0xff] %v2918_v20 }
  0xe6   : > { %v2864_v28 = vpack.c.bf16 %v879_v24, %v877_v23  ;;  %v880_v29 = vmax.f32 %v725_v25, 0.0  ;;  %v729_v32 = vadd.f32 %v728_v26, %v408_v12 }
  0xe7   : > { %v730_v30 = vpop.f32.mrf.mxu0 }
  0xe8   : > { %v2866_v31 = vpack.c.bf16 %v880_v29, %v878_v27  ;;  %v731_v34 = vadd.f32 %v730_v30, %v408_v12  ;;  %v881_v3 = vmax.f32 %v729_v32, 0.0  ;;  %v2922_v25 = vpop.permute.xlu1 %502 }
  0xe9   : > { %v732_v33 = vpop.f32.mrf.mxu0  ;;  %3366 = vst [vmem:[#allocation8_spill] sm:$0xff] %v2922_v25 }
  0xea   : > { %v733_v35 = vadd.f32 %v732_v33, %v413_v13  ;;  %v882_v40 = vmax.f32 %v731_v34, 0.0 }
  0xeb   : > { %v734_v36 = vpop.f32.mrf.mxu0 }
  0xec   : > { %v883_v37 = vmax.f32 %v733_v35, 0.0  ;;  %v735_v38 = vadd.f32 %v734_v36, %v413_v13  ;;  %v2912_v13 = vpop.permute.xlu0 %517  ;;  %v2929_v35 = vpop.permute.xlu1 %492 }
  0xed   : > { %v2868_v39 = vpop.f32.mrf.mxu0  ;;  %3361 = vst [vmem:[#allocation3_spill] sm:$0xff] %v2912_v13 }
  0xee   : > { %v2870_v41 = vpack.c.bf16 %v883_v37, %v881_v3  ;;  %v884_v42 = vmax.f32 %v735_v38, 0.0 }
  0xef   : > { %v2872_v43 = vpop.f32.mrf.mxu0 }
  0xf0   : > { %v2874_v44 = vpack.c.bf16 %v884_v42, %v882_v40  ;;  %v2916_v18 = vpop.permute.xlu0 %507 }
  0xf1   : > { %v2876_v45 = vpop.f32.mrf.mxu0  ;;  %3363 = vst [vmem:[#allocation5_spill] sm:$0xff] %v2916_v18 }
  0xf3   : > { %v2878_v46 = vpop.f32.mrf.mxu0 }
  0xf4   : > { %v2920_v23 = vpop.permute.xlu0 %497 }
  0xf5   : > { %v2882_v48 = vpop.f32.mrf.mxu0  ;;  %3365 = vst [vmem:[#allocation7_spill] sm:$0xff] %v2920_v23 }
  0xf7   : > { %v2886_v50 = vpop.f32.mrf.mxu0 }
  0xf8   : > { %v2924_v29 = vpop.permute.xlu0 %487 }
  0xf9   : > { %v2888_v51 = vpop.f32.mrf.mxu0 }
  0xfb   : > { %v2892_v55 = vpop.f32.mrf.mxu0 }
  0xfc   : > { %v478_v25 = vpop.permute.xlu0 %477 }
  0xfd   : > { %v2896_v58 = vpop.f32.mrf.mxu0 }
  0xff   : > { %v2898_v60 = vpop.f32.mrf.mxu0 }
 0x101   : > { %v2908_v2 = vpop.f32.mrf.mxu0 }
 0x103   : > { %v764_v7 = vpop.f32.mrf.mxu0 }
 0x105   : > { %v768_v12 = vpop.f32.mrf.mxu0 }
 0x107   : > { %v770_v14 = vpop.f32.mrf.mxu0 }
 0x109   : > { %v772_v16 = vpop.f32.mrf.mxu0 }
 0x10b   : > { %v774_v17 = vpop.f32.mrf.mxu0 }
 0x10c   : > { %v775_v63 = vadd.f32 %v774_v17, %v2841_v0 }
 0x10d   : > { %v778_v19 = vpop.f32.mrf.mxu0 }
 0x10f   : > { %v780_v21 = vpop.f32.mrf.mxu0 }
 0x110   : > { %v781_v37 = vadd.f32 %v780_v21, %v2815_v54 }
 0x111   : > { %v782_v22 = vpop.f32.mrf.mxu0 }
 0x112   : > { %v783_v40 = vadd.f32 %v782_v22, %v2828_v59  ;;  %v773_v22 = vadd.f32 %v772_v16, %v2841_v0 }
 0x113   : > { %v784_v24 = vpop.f32.mrf.mxu0 }
 0x114   : > { %v785_v32 = vadd.f32 %v784_v24, %v2828_v59  ;;  %v765_v59 = vadd.f32 %v764_v7, %v2854_v6 }
 0x115   : > { %v788_v26 = vpop.f32.mrf.mxu0 }
 0x116   : > { %v789_v36 = vadd.f32 %v788_v26, %v2810_v52  ;;  %v904_v24 = vmax.f32 %v785_v32, 0.0  ;;  %v902_v26 = vmax.f32 %v781_v37, 0.0 }
 0x117   : > { %v790_v27 = vpop.f32.mrf.mxu0 }
 0x118   : > { %v791_v33 = vadd.f32 %v790_v27, %v2810_v52  ;;  %v905_v18 = vmax.f32 %v789_v36, 0.0  ;;  %v771_v52 = vadd.f32 %v770_v14, %v2836_v62  ;;  %v761_v14 = vadd.f32 %v2898_v60, %v2849_v4 }
 0x119   : > { %v792_v30 = vpop.f32.mrf.mxu0 }
 0x11a   : > { %v793_v34 = vadd.f32 %v792_v30, %v2823_v57  ;;  %v906_v23 = vmax.f32 %v791_v33, 0.0  ;;  %v779_v30 = vadd.f32 %v778_v19, %v2815_v54  ;;  %v900_v33 = vmax.f32 %v775_v63, 0.0 }
 0x11b   : > { %v794_v3 = vpop.f32.mrf.mxu0  ;;  %v755_v54 = vadd.f32 %v2892_v55, %v2858_v9  ;;  %v769_v19 = vadd.f32 %v768_v12, %v2836_v62  ;;  %v898_v0 = vmax.f32 %v771_v52, 0.0  ;;  %v899_v55 = vmax.f32 %v773_v22, 0.0 }
 0x11c   : > { %v795_v38 = vadd.f32 %v794_v3, %v2823_v57  ;;  %v907_v42 = vmax.f32 %v793_v34, 0.0  ;;  %v483_v57 = vpop.permute.xlu1 %482  ;;  %v903_v34 = vmax.f32 %v783_v40, 0.0  ;;  %v954_v3 = vpack.c.bf16 %v904_v24, %v902_v26 }
 0x11d   : > { %v798_v61 = vpop.f32.mrf.mxu0  ;;  %v901_v7 = vmax.f32 %v779_v30, 0.0  ;;  %v952_v60 = vpack.c.bf16 %v900_v33, %v898_v0  ;;  %v751_v63 = vadd.f32 %v2886_v50, %v2856_v8  ;;  %v892_v26 = vmax.f32 %v755_v54, 0.0 }
 0x11e   : > { %v908_v27 = vmax.f32 %v795_v38, 0.0  ;;  %v799_v13 = vadd.f32 %v798_v61, %v478_v25  ;;  %v955_v17 = vpack.c.bf16 %v907_v42, %v905_v18  ;;  %v759_v61 = vadd.f32 %v2896_v58, %v2849_v4 }
 0x11f   : > { %v800_v20 = vpop.f32.mrf.mxu0  ;;  %v953_v37 = vpack.c.bf16 %v903_v34, %v901_v7  ;;  %v753_v4 = vadd.f32 %v2888_v51, %v2858_v9  ;;  %v749_v22 = vadd.f32 %v2882_v48, %v2856_v8  ;;  %v890_v9 = vmax.f32 %v751_v63, 0.0 }
 0x120   : > { %v956_v21 = vpack.c.bf16 %v908_v27, %v906_v23  ;;  %v801_v38 = vadd.f32 %v800_v20, %v478_v25  ;;  %v909_v16 = vmax.f32 %v799_v13, 0.0  ;;  %v763_v20 = vadd.f32 %v2908_v2, %v2854_v6 }
 0x121   : > { %v802_v32 = vpop.f32.mrf.mxu0  ;;  %v896_v25 = vmax.f32 %v765_v59, 0.0  ;;  %v897_v13 = vmax.f32 %v769_v19, 0.0  ;;  %v894_v6 = vmax.f32 %v761_v14, 0.0  ;;  %v745_v27 = vadd.f32 %v2878_v46, %v2862_v11 }
 0x122   : > { %v803_v15 = vadd.f32 %v802_v32, %v483_v57  ;;  %1357 = vmatprep.subr.bf16.mxu0 %v956_v21  ;;  %2245 = vmatprep.subr.bf16.mxu1 %v956_v21  ;;  %v910_v42 = vmax.f32 %v801_v38, 0.0  ;;  %v895_v58 = vmax.f32 %v763_v20, 0.0  ;;  %v741_v59 = vadd.f32 %v2872_v43, %v2860_v10 }
 0x123   : > { %v804_v23 = vpop.f32.mrf.mxu0  ;;  %1358 = vmatpush1.bf16.msra.mxu0 %v955_v17  ;;  %2261 = vmatpush1.bf16.msra.mxu1 %v955_v17  ;;  %v951_v30 = vpack.c.bf16 %v899_v55, %v897_v13  ;;  %v950_v21 = vpack.c.bf16 %v896_v25, %v894_v6  ;;  %v893_v34 = vmax.f32 %v759_v61, 0.0  ;;  %v888_v33 = vmax.f32 %v745_v27, 0.0 }
 0x124   : > { %v911_v18 = vmax.f32 %v803_v15, 0.0  ;;  %v805_v36 = vadd.f32 %v804_v23, %v483_v57  ;;  %1359 = vmatprep.subr.bf16.mxu0 %v954_v3  ;;  %2246 = vmatprep.subr.bf16.mxu1 %v954_v3  ;;  %v891_v3 = vmax.f32 %v753_v4, 0.0  ;;  %v948_v8 = vpack.c.bf16 %v892_v26, %v890_v9 }
 0x125   : > { %v808_v40 = vpop.f32.mrf.mxu0  ;;  %v949_v43 = vpack.c.bf16 %v895_v58, %v893_v34  ;;  %v739_v19 = vadd.f32 %v2868_v39, %v2860_v10  ;;  %v889_v7 = vmax.f32 %v749_v22, 0.0  ;;  %v886_v23 = vmax.f32 %v741_v59, 0.0 }
 0x126   : > { %v2947_v62 = vpack.c.bf16 %v911_v18, %v909_v16  ;;  %v912_v12 = vmax.f32 %v805_v36, 0.0  ;;  %v809_v24 = vadd.f32 %v808_v40, %v2924_v29 }
 0x127   : > { %v810_v15 = vpop.f32.mrf.mxu0  ;;  %1360 = vmatpush1.bf16.msra.mxu0 %v953_v37  ;;  %2262 = vmatpush1.bf16.msra.mxu1 %v953_v37  ;;  %v947_v0 = vpack.c.bf16 %v891_v3, %v889_v7  ;;  %v946_v18 = vpack.c.bf16 %v888_v33, %v886_v23  ;;  %v885_v36 = vmax.f32 %v739_v19, 0.0 }
 0x128   : > { %v2953_v2 = vpack.c.bf16 %v912_v12, %v910_v42  ;;  %1361 = vmatprep.subr.bf16.mxu0 %v952_v60  ;;  %2247 = vmatprep.subr.bf16.mxu1 %v952_v60  ;;  %v811_v50 = vadd.f32 %v810_v15, %v2924_v29  ;;  %v913_v51 = vmax.f32 %v809_v24, 0.0  ;;  %v743_v29 = vadd.f32 %v2876_v45, %v2862_v11 }
 0x129   : > { %v812_v52 = vpop.f32.mrf.mxu0 }
 0x12a   : > { %v813_v57 = vadd.f32 %v812_v52, %v2929_v35  ;;  %v914_v48 = vmax.f32 %v811_v50, 0.0  ;;  %v887_v45 = vmax.f32 %v743_v29, 0.0 }
 0x12b   : > { %v814_v46 = vpop.f32.mrf.mxu0  ;;  %1362 = vmatpush1.bf16.msra.mxu0 %v951_v30  ;;  %2263 = vmatpush1.bf16.msra.mxu1 %v951_v30 }
 0x12c   : > { %v915_v17 = vmax.f32 %v813_v57, 0.0  ;;  %v815_v32 = vadd.f32 %v814_v46, %v2929_v35  ;;  %1363 = vmatprep.subr.bf16.mxu0 %v950_v21  ;;  %2248 = vmatprep.subr.bf16.mxu1 %v950_v21  ;;  %v945_v10 = vpack.c.bf16 %v887_v45, %v885_v36 }
 0x12d   : > { %v2969_v38 = vpop.f32.mrf.mxu0 }
 0x12e   : > { %v2971_v54 = vpack.c.bf16 %v915_v17, %v913_v51  ;;  %v916_v14 = vmax.f32 %v815_v32, 0.0 }
 0x12f   : > { %v2975_v35 = vpop.f32.mrf.mxu0  ;;  %1364 = vmatpush1.bf16.msra.mxu0 %v949_v43  ;;  %2264 = vmatpush1.bf16.msra.mxu1 %v949_v43 }
 0x130   : > { %v2977_v11 = vpack.c.bf16 %v916_v14, %v914_v48  ;;  %1365 = vmatprep.subr.bf16.mxu0 %v948_v8  ;;  %2249 = vmatprep.subr.bf16.mxu1 %v948_v8 }
 0x131   : > { %v2979_v16 = vpop.f32.mrf.mxu0 }
 0x133   : > { %v2981_v20 = vpop.f32.mrf.mxu0  ;;  %1366 = vmatpush1.bf16.msra.mxu0 %v947_v0  ;;  %2265 = vmatpush1.bf16.msra.mxu1 %v947_v0 }
 0x134   : > { %1367 = vmatprep.subr.bf16.mxu0 %v946_v18  ;;  %2250 = vmatprep.subr.bf16.mxu1 %v946_v18  ;;  %v3369_v18 = vld [vmem:[#allocation6_spill] sm:$0xff] }
 0x135   : > { %v2983_v39 = vpop.f32.mrf.mxu0 }
 0x137   : > { %v2985_v25 = vpop.f32.mrf.mxu0  ;;  %1368 = vmatpush1.bf16.msra.mxu0 %v945_v10  ;;  %2266 = vmatpush1.bf16.msra.mxu1 %v945_v10 }
 0x138   : > { %1369 = vmatprep.subr.bf16.mxu0 %v2874_v44  ;;  %2251 = vmatprep.subr.bf16.mxu1 %v2874_v44 }
 0x139   : > { %v2989_v55 = vpop.f32.mrf.mxu0 }
 0x13b   : > { %v834_v37 = vpop.f32.mrf.mxu0  ;;  %1370 = vmatpush1.bf16.msra.mxu0 %v2870_v41  ;;  %2267 = vmatpush1.bf16.msra.mxu1 %v2870_v41 }
 0x13c   : > { %1371 = vmatprep.subr.bf16.mxu0 %v2866_v31  ;;  %2252 = vmatprep.subr.bf16.mxu1 %v2866_v31  ;;  %v835_v36 = vadd.f32 %v834_v37, %v3369_v18 }
 0x13d   : > { %v838_v40 = vpop.f32.mrf.mxu0 }
 0x13f   : > { %v840_v60 = vpop.f32.mrf.mxu0  ;;  %1372 = vmatpush1.bf16.msra.mxu0 %v2864_v28  ;;  %2268 = vmatpush1.bf16.msra.mxu1 %v2864_v28 }
 0x141   : > { %v842_v42 = vpop.f32.mrf.mxu0 }
 0x143   : > { %v844_v12 = vpop.f32.mrf.mxu0 }
 0x145   : > { %v848_v44 = vpop.f32.mrf.mxu0 }
 0x146   : > { %v849_v14 = vadd.f32 %v848_v44, %v2906_v1 }
 0x147   : > { %v850_v61 = vpop.f32.mrf.mxu0 }
 0x148   : > { %v851_v32 = vadd.f32 %v850_v61, %v2906_v1  ;;  %v3370_v1 = vld [vmem:[#allocation5_spill] sm:$0xff] }
 0x149   : > { %v852_v13 = vpop.f32.mrf.mxu0  ;;  %v831_v44 = vadd.f32 %v2985_v25, %v3370_v1  ;;  %v3372_v25 = vld [vmem:[#allocation7_spill] sm:$0xff] }
 0x14a   : > { %v853_v33 = vadd.f32 %v852_v13, %v2910_v5  ;;  %v930_v23 = vmax.f32 %v851_v32, 0.0  ;;  %v929_v13 = vmax.f32 %v849_v14, 0.0  ;;  %v2342_v32 = vld [vmem:[%s3349_s3 + $0x74] ss:$8 sps:$4 sm:$0xff]   ;;  %v2357_v14 = vld [vmem:[%s3349_s3 + $0xc4] ss:$8 sps:$4 sm:$0xff]  }
 0x14b   : > { %v854_v15 = vpop.f32.mrf.mxu0 }
 0x14c   : > { %v855_v22 = vadd.f32 %v854_v15, %v2910_v5  ;;  %v931_v45 = vmax.f32 %v853_v33, 0.0  ;;  %v2347_v33 = vld [vmem:[%s3349_s3 + $0x80] ss:$8 sps:$4 sm:$0xff]  }
 0x14d   : > { %v858_v63 = vpop.f32.mrf.mxu0 }
 0x14e   : > { %v859_v51 = vadd.f32 %v858_v63, %v2890_v53  ;;  %v967_v63 = vpack.c.bf16 %v931_v45, %v929_v13  ;;  %v2366_v45 = vld [vmem:[%s3349_s3 + $0xf4] ss:$8 sps:$4 sm:$0xff]  }
 0x14f   : > { %v860_v6 = vpop.f32.mrf.mxu0 }
 0x150   : > { %v861_v21 = vadd.f32 %v860_v6, %v2890_v53  ;;  %v933_v19 = vmax.f32 %v859_v51, 0.0  ;;  %v3368_v53 = vld [vmem:[#allocation3_spill] sm:$0xff]  ;;  %v3371_v6 = vld [vmem:[#allocation8_spill] sm:$0xff] }
 0x151   : > { %v862_v24 = vpop.f32.mrf.mxu0  ;;  %v841_v7 = vadd.f32 %v840_v60, %v3368_v53  ;;  %v839_v61 = vadd.f32 %v838_v40, %v3368_v53  ;;  %v825_v37 = vadd.f32 %v2981_v20, %v3371_v6  ;;  %v829_v40 = vadd.f32 %v2983_v39, %v3370_v1  ;;  %v2339_v51 = vld [vmem:[%s3349_s3 + $0x64] ss:$8 sps:$4 sm:$0xff]   ;;  %v2360_v53 = vld [vmem:[%s3349_s3 + $0xd4] ss:$8 sps:$4 sm:$0xff]  }
 0x152   : > { %v863_v57 = vadd.f32 %v862_v24, %v2894_v56  ;;  %v934_v29 = vmax.f32 %v861_v21, 0.0  ;;  %v924_v24 = vmax.f32 %v835_v36, 0.0  ;;  %v1045_v36 = vpop.permute.xlu1 %1044 }
 0x153   : > { %v864_v41 = vpop.f32.mrf.mxu0  ;;  %v926_v60 = vmax.f32 %v841_v7, 0.0  ;;  %v920_v20 = vmax.f32 %v825_v37, 0.0  ;;  %v921_v39 = vmax.f32 %v829_v40, 0.0  ;;  %v2362_v7 = vld [vmem:[%s3349_s3 + $0xd0] ss:$8 sps:$4 sm:$0xff]  }
 0x154   : > { %v865_v31 = vadd.f32 %v864_v41, %v2894_v56  ;;  %v935_v3 = vmax.f32 %v863_v57, 0.0  ;;  %v932_v56 = vmax.f32 %v855_v22, 0.0  ;;  %v2333_v22 = vld [vmem:[%s3349_s3 + $0x24] ss:$8 sps:$4 sm:$0xff]  }
 0x155   : > { %v868_v27 = vpop.f32.mrf.mxu0 }
 0x156   : > { %v869_v28 = vadd.f32 %v868_v27, %v2880_v47  ;;  %v936_v34 = vmax.f32 %v865_v31, 0.0  ;;  %v969_v0 = vpack.c.bf16 %v935_v3, %v933_v19  ;;  %v925_v27 = vmax.f32 %v839_v61, 0.0  ;;  %v2348_v3 = vld [vmem:[%s3349_s3 + $0x94] ss:$8 sps:$4 sm:$0xff]   ;;  %v2359_v19 = vld [vmem:[%s3349_s3 + $0xc0] ss:$8 sps:$4 sm:$0xff]  }
 0x157   : > { %v870_v4 = vpop.f32.mrf.mxu0 }
 0x158   : > { %v871_v30 = vadd.f32 %v870_v4, %v2880_v47  ;;  %v937_v17 = vmax.f32 %v869_v28, 0.0  ;;  %v970_v48 = vpack.c.bf16 %v936_v34, %v934_v29  ;;  %v821_v4 = vadd.f32 %v2975_v35, %v3372_v25  ;;  %v2335_v34 = vld [vmem:[%s3349_s3 + $0x54] ss:$8 sps:$4 sm:$0xff]   ;;  %v2344_v29 = vld [vmem:[%s3349_s3 + $0x70] ss:$8 sps:$4 sm:$0xff]  }
 0x159   : > { %v872_v58 = vpop.f32.mrf.mxu0  ;;  %v819_v28 = vadd.f32 %v2969_v38, %v3372_v25  ;;  %v2321_v38 = vld [vmem:[%s3349_s3] ss:$8 sps:$4 sm:$0xff]  }
 0x15a   : > { %v873_v52 = vadd.f32 %v872_v58, %v2884_v49  ;;  %v938_v46 = vmax.f32 %v871_v30, 0.0  ;;  %v922_v58 = vmax.f32 %v831_v44, 0.0 }
 0x15b   : > { %v874_v26 = vpop.f32.mrf.mxu0  ;;  %v917_v57 = vmax.f32 %v819_v28, 0.0 }
 0x15c   : > { %v875_v50 = vadd.f32 %v874_v26, %v2884_v49  ;;  %v939_v59 = vmax.f32 %v873_v52, 0.0  ;;  %v3367_v49 = vld [vmem:[#allocation4_spill] sm:$0xff]  ;;  %v964_v52 = vpack.c.bf16 %v924_v24, %v922_v58  ;;  %v918_v26 = vmax.f32 %v821_v4, 0.0 }
 0x15d   : > { %v845_v8 = vadd.f32 %v844_v12, %v3367_v49  ;;  %v843_v5 = vadd.f32 %v842_v42, %v3367_v49  ;;  %v968_v12 = vpack.c.bf16 %v932_v56, %v930_v23  ;;  %v833_v42 = vadd.f32 %v2989_v55, %v3369_v18  ;;  %v2351_v49 = vld [vmem:[%s3349_s3 + $0xa4] ss:$8 sps:$4 sm:$0xff]   ;;  %v2354_v56 = vld [vmem:[%s3349_s3 + $0xb4] ss:$8 sps:$4 sm:$0xff]   ;;  %v1040_v18 = vpop.permute.xlu0 %1039 }
 0x15e   : > { %v940_v9 = vmax.f32 %v875_v50, 0.0  ;;  %v971_v43 = vpack.c.bf16 %v939_v59, %v937_v17  ;;  %v823_v55 = vadd.f32 %v2979_v16, %v3371_v6  ;;  %v962_v50 = vpack.c.bf16 %v920_v20, %v918_v26  ;;  %v2324_v59 = vld [vmem:[%s3349_s3 + $0x30] ss:$8 sps:$4 sm:$0xff]   ;;  %v2341_v17 = vld [vmem:[%s3349_s3 + $0x60] ss:$8 sps:$4 sm:$0xff]  }
 0x15f   : > { %v928_v10 = vmax.f32 %v845_v8, 0.0  ;;  %v927_v15 = vmax.f32 %v843_v5, 0.0  ;;  %v923_v31 = vmax.f32 %v833_v42, 0.0  ;;  %v2353_v8 = vld [vmem:[%s3349_s3 + $0xa0] ss:$8 sps:$4 sm:$0xff]  }
 0x160   : > { %v972_v47 = vpack.c.bf16 %v940_v9, %v938_v46  ;;  %v919_v35 = vmax.f32 %v823_v55, 0.0  ;;  %v2337_v46 = vld [vmem:[%s3349_s3 + $0x20] ss:$8 sps:$4 sm:$0xff]   ;;  %v2338_v9 = vld [vmem:[%s3349_s3 + $0x50] ss:$8 sps:$4 sm:$0xff]  }
 0x161   : > { %v966_v41 = vpack.c.bf16 %v928_v10, %v926_v60  ;;  %v965_v30 = vpack.c.bf16 %v927_v15, %v925_v27  ;;  %v963_v21 = vpack.c.bf16 %v923_v31, %v921_v39  ;;  %v2363_v23 = vld [vmem:[%s3349_s3 + $0xe4] ss:$8 sps:$4 sm:$0xff]   ;;  %v2365_v5 = vld [vmem:[%s3349_s3 + $0xe0] ss:$8 sps:$4 sm:$0xff]   ;;  %v3126_v10 = vpop.permute.xlu0 %1049 }
 0x162   : > { %1373 = vmatprep.subr.bf16.mxu0 %v972_v47  ;;  %2253 = vmatprep.subr.bf16.mxu1 %v972_v47  ;;  %v961_v16 = vpack.c.bf16 %v919_v35, %v917_v57  ;;  %v2345_v47 = vld [vmem:[%s3349_s3 + $0x84] ss:$8 sps:$4 sm:$0xff]  }
 0x163   : > { %1374 = vmatpush2.bf16.msra.mxu0 %v971_v43  ;;  %2269 = vmatpush2.bf16.msra.mxu1 %v971_v43  ;;  %v2350_v43 = vld [vmem:[%s3349_s3 + $0x90] ss:$8 sps:$4 sm:$0xff]  }
 0x164   : > { %1375 = vmatprep.subr.bf16.mxu0 %v970_v48  ;;  %2254 = vmatprep.subr.bf16.mxu1 %v970_v48  ;;  %v2356_v48 = vld [vmem:[%s3349_s3 + $0xb0] ss:$8 sps:$4 sm:$0xff]  }
 0x165   : > { %v3130_v61 = vpop.permute.xlu0 %1059 }
 0x167   : > { %1376 = vmatpush2.bf16.msra.mxu0 %v969_v0  ;;  %2270 = vmatpush2.bf16.msra.mxu1 %v969_v0  ;;  %v2368_v0 = vld [vmem:[%s3349_s3 + $0xf0] ss:$8 sps:$4 sm:$0xff]  }
 0x168   : > { %1377 = vmatprep.subr.bf16.mxu0 %v968_v12  ;;  %2255 = vmatprep.subr.bf16.mxu1 %v968_v12  ;;  %v3128_v12 = vpop.permute.xlu1 %1054 }
 0x169   : > { %v1070_v1 = vpop.permute.xlu0 %1069 }
 0x16b   : > { %1378 = vmatpush2.bf16.msra.mxu0 %v967_v63  ;;  %2271 = vmatpush2.bf16.msra.mxu1 %v967_v63 }
 0x16c   : > { %1379 = vmatprep.subr.bf16.mxu0 %v966_v41  ;;  %2256 = vmatprep.subr.bf16.mxu1 %v966_v41  ;;  %v3132_v13 = vpop.permute.xlu1 %1064 }
 0x16d   : > { %v3134_v60 = vpop.permute.xlu0 %1079 }
 0x16f   : > { %1380 = vmatpush2.bf16.msra.mxu0 %v965_v30  ;;  %2272 = vmatpush2.bf16.msra.mxu1 %v965_v30 }
 0x170   : > { %1381 = vmatprep.subr.bf16.mxu0 %v964_v52  ;;  %2257 = vmatprep.subr.bf16.mxu1 %v964_v52  ;;  %v1075_v44 = vpop.permute.xlu1 %1074 }
 0x171   : > { %v3138_v15 = vpop.permute.xlu0 %1089 }
 0x173   : > { %1382 = vmatpush2.bf16.msra.mxu0 %v963_v21  ;;  %2273 = vmatpush2.bf16.msra.mxu1 %v963_v21 }
 0x174   : > { %1383 = vmatprep.subr.bf16.mxu0 %v962_v50  ;;  %2258 = vmatprep.subr.bf16.mxu1 %v962_v50  ;;  %v3136_v42 = vpop.permute.xlu1 %1084 }
 0x175   : > { %v3142_v6 = vpop.permute.xlu0 %1099 }
 0x177   : > { %1384 = vmatpush2.bf16.msra.mxu0 %v961_v16  ;;  %2274 = vmatpush2.bf16.msra.mxu1 %v961_v16 }
 0x178   : > { %1385 = vmatprep.subr.bf16.mxu0 %v2977_v11  ;;  %2259 = vmatprep.subr.bf16.mxu1 %v2977_v11  ;;  %v2331_v11 = vld [vmem:[%s3349_s3 + $0x10] ss:$8 sps:$4 sm:$0xff]   ;;  %v3140_v63 = vpop.permute.xlu1 %1094 }
 0x179   : > { %v3146_v24 = vpop.permute.xlu0 %1109 }
 0x17b   : > { %1386 = vmatpush2.bf16.msra.mxu0 %v2971_v54  ;;  %2275 = vmatpush2.bf16.msra.mxu1 %v2971_v54  ;;  %v2327_v54 = vld [vmem:[%s3349_s3 + $0x14] ss:$8 sps:$4 sm:$0xff]  }
 0x17c   : > { %1387 = vmatprep.subr.bf16.mxu0 %v2953_v2  ;;  %2260 = vmatprep.subr.bf16.mxu1 %v2953_v2  ;;  %v2329_v2 = vld [vmem:[%s3349_s3 + $0x44] ss:$8 sps:$4 sm:$0xff]   ;;  %v3144_v37 = vpop.permute.xlu1 %1104 }
 0x17d   : > { %v3150_v40 = vpop.permute.xlu0 %1119 }
 0x17f   : > { %1388 = vmatpush2.bf16.msra.mxu0 %v2947_v62  ;;  %2276 = vmatpush2.bf16.msra.mxu1 %v2947_v62  ;;  %v2332_v62 = vld [vmem:[%s3349_s3 + $0x40] ss:$8 sps:$4 sm:$0xff]  }
 0x180   : > { %v3148_v41 = vpop.permute.xlu1 %1114 }
 0x181   : > { %v3154_v25 = vpop.permute.xlu0 %1129 }
 0x182   : > { %1390 = vmatmul.mubr.bf16.vlgmr.msra.gmra.mxu0 %v2321_v38  ;;  %1420 = vmatmul.mubr.bf16.vlgmr.msra.gmra.mxu1 %v2324_v59 }
 0x183   : > { %1399 = vmatprep.mubr.bf16.mxu0 %v2327_v54  ;;  %1429 = vmatprep.mubr.bf16.mxu1 %v2329_v2 }
 0x184   : > { %v3152_v27 = vpop.permute.xlu1 %1124 }
 0x185   : > { %v3158_v58 = vpop.permute.xlu0 %1139 }
 0x186   : > { %3373 = vst [vmem:[#allocation4_spill] sm:$0xff] %v3158_v58 }
 0x188   : > { %v3156_v4 = vpop.permute.xlu1 %1134 }
 0x189   : > { %v3162_v31 = vpop.permute.xlu0 %1749 }
 0x18a   : > { %1400 = vmatmul.mubr.bf16.gmra.mxu0 %v2331_v11  ;;  %1430 = vmatmul.mubr.bf16.gmra.mxu1 %v2332_v62 }
 0x18b   : > { %1409 = vmatprep.mubr.bf16.mxu0 %v2333_v22  ;;  %1439 = vmatprep.mubr.bf16.mxu1 %v2335_v34 }
 0x18c   : > { %v3160_v55 = vpop.permute.xlu1 %1744 }
 0x18d   : > { %v3166_v20 = vpop.permute.xlu0 %1759 }
 0x190   : > { %v3164_v30 = vpop.permute.xlu1 %1754 }
 0x191   : > { %v3170_v28 = vpop.permute.xlu0 %1769 }
 0x192   : > { %1410 = vmatmul.mubr.bf16.gmra.mxu0 %v2337_v46  ;;  %1440 = vmatmul.mubr.bf16.gmra.mxu1 %v2338_v9 }
 0x193   : > { %1449 = vmatprep.mubr.bf16.mxu1 %v2339_v51 }
 0x194   : > { %v3168_v52 = vpop.permute.xlu1 %1764 }
 0x195   : > { %v3174_v57 = vpop.permute.xlu0 %1779 }
 0x198   : > { %v3172_v35 = vpop.permute.xlu1 %1774 }
 0x19a   : > { %1450 = vmatmul.mubr.bf16.gmra.mxu1 %v2341_v17 }
 0x19b   : > { %1459 = vmatprep.mubr.bf16.mxu1 %v2342_v32  ;;  %v3178_v32 = vpop.permute.xlu0 %1789 }
 0x19c   : > { %v3176_v22 = vpop.permute.xlu1 %1784 }
 0x1a2   : > { %1460 = vmatmul.mubr.bf16.gmra.mxu1 %v2344_v29 }
 0x1a3   : > { %1469 = vmatprep.mubr.bf16.mxu1 %v2345_v47 }
 0x1aa   : > { %1470 = vmatmul.mubr.bf16.gmra.mxu1 %v2347_v33 }
 0x1ab   : > { %1479 = vmatprep.mubr.bf16.mxu1 %v2348_v3 }
 0x1b2   : > { %1480 = vmatmul.mubr.bf16.gmra.mxu1 %v2350_v43 }
 0x1b3   : > { %1489 = vmatprep.mubr.bf16.mxu1 %v2351_v49 }
 0x1ba   : > { %1490 = vmatmul.mubr.bf16.gmra.mxu1 %v2353_v8 }
 0x1bb   : > { %1499 = vmatprep.mubr.bf16.mxu1 %v2354_v56 }
 0x1c2   : > { %1500 = vmatmul.mubr.bf16.gmra.mxu1 %v2356_v48 }
 0x1c3   : > { %1509 = vmatprep.mubr.bf16.mxu1 %v2357_v14 }
 0x1ca   : > { %1510 = vmatmul.mubr.bf16.gmra.mxu1 %v2359_v19 }
 0x1cb   : > { %1519 = vmatprep.mubr.bf16.mxu1 %v2360_v53 }
 0x1d2   : > { %1520 = vmatmul.mubr.bf16.gmra.mxu1 %v2362_v7  ;;  %v3180_v7 = vpop.permute.xlu1 %1794 }
 0x1d3   : > { %1529 = vmatprep.mubr.bf16.mxu1 %v2363_v23 }
 0x1da   : > { %1530 = vmatmul.mubr.bf16.gmra.mxu1 %v2365_v5 }
 0x1db   : > { %1539 = vmatprep.mubr.bf16.mxu1 %v2366_v45 }
 0x1e2   : > { %1540 = vmatmul.mubr.bf16.gmra.mxu1 %v2368_v0 }
 0x242   : > { %v1391_v39 = vpop.f32.mrf.mxu0  ;;  %v1421_v26 = vpop.f32.mrf.mxu1 }
 0x243   : > { %v1392_v59 = vadd.f32 %v1391_v39, %v1040_v18  ;;  %v1422_v46 = vadd.f32 %v1421_v26, %v1070_v1 }
 0x244   : > { %v1393_v21 = vpop.f32.mrf.mxu0  ;;  %v1423_v50 = vpop.f32.mrf.mxu1 }
 0x245   : > { %v1550_v29 = vmax.f32 %v1392_v59, 0.0  ;;  %v1394_v33 = vadd.f32 %v1393_v21, %v1040_v18  ;;  %v1424_v8 = vadd.f32 %v1423_v50, %v1070_v1  ;;  %v1562_v48 = vmax.f32 %v1422_v46, 0.0 }
 0x246   : > { %v1395_v16 = vpop.f32.mrf.mxu0  ;;  %v1425_v38 = vpop.f32.mrf.mxu1 }
 0x247   : > { %v1396_v54 = vadd.f32 %v1395_v16, %v1045_v36  ;;  %v1426_v2 = vadd.f32 %v1425_v38, %v1075_v44  ;;  %v1551_v45 = vmax.f32 %v1394_v33, 0.0  ;;  %v1563_v18 = vmax.f32 %v1424_v8, 0.0 }
 0x248   : > { %v1397_v11 = vpop.f32.mrf.mxu0  ;;  %v1427_v62 = vpop.f32.mrf.mxu1 }
 0x249   : > { %v1552_v34 = vmax.f32 %v1396_v54, 0.0  ;;  %v1398_v9 = vadd.f32 %v1397_v11, %v1045_v36  ;;  %v1428_v47 = vadd.f32 %v1427_v62, %v1075_v44  ;;  %v1564_v3 = vmax.f32 %v1426_v2, 0.0  ;;  %v3183_v44 = vpop.permute.xlu0 %1799 }
 0x24a   : > { %v1401_v51 = vpop.f32.mrf.mxu0  ;;  %v1431_v17 = vpop.f32.mrf.mxu1 }
 0x24b   : > { %v1614_v56 = vpack.c.bf16 %v1552_v34, %v1550_v29  ;;  %v1553_v14 = vmax.f32 %v1398_v9, 0.0  ;;  %v1565_v23 = vmax.f32 %v1428_v47, 0.0  ;;  %v1402_v5 = vadd.f32 %v1401_v51, %v3126_v10  ;;  %v3191_v29 = vpop.permute.xlu1 %1804 }
 0x24c   : > { %v1403_v43 = vpop.f32.mrf.mxu0  ;;  %v1433_v49 = vpop.f32.mrf.mxu1  ;;  %v1620_v0 = vpack.c.bf16 %v1564_v3, %v1562_v48  ;;  %v3188_v11 = vadd.f32 %v1431_v17, %v3134_v60 }
 0x24d   : > { %v1646_v26 = vunpack.c.l.bf16 %v1614_v56  ;;  %v1648_v21 = vunpack.c.h.bf16 %v1614_v56  ;;  %v1615_v50 = vpack.c.bf16 %v1553_v14, %v1551_v45  ;;  %v1404_v16 = vadd.f32 %v1403_v43, %v3126_v10  ;;  %v3195_v14 = vpop.permute.xlu0 %1809 }
 0x24e   : > { %v1405_v19 = vpop.f32.mrf.mxu0  ;;  %v1435_v53 = vpop.f32.mrf.mxu1  ;;  %v1621_v54 = vpack.c.bf16 %v1565_v23, %v1563_v18  ;;  %v1554_v2 = vmax.f32 %v1402_v5, 0.0  ;;  %v1658_v34 = vunpack.c.l.bf16 %v1620_v0  ;;  %v1660_v10 = vunpack.c.h.bf16 %v1620_v0 }
 0x24f   : > { %v1406_v1 = vadd.f32 %v1405_v19, %v3128_v12  ;;  %v1902_v47 = vmul.f32 %v3160_v55, %v1646_v26  ;;  %v1904_v33 = vmul.f32 %v3162_v31, %v1648_v21  ;;  %v1647_v43 = vunpack.c.l.bf16 %v1615_v50 }
 0x250   : > { %v1407_v36 = vpop.f32.mrf.mxu0  ;;  %v1437_v39 = vpop.f32.mrf.mxu1  ;;  %v1555_v8 = vmax.f32 %v1404_v16, 0.0  ;;  %v1649_v19 = vunpack.c.h.bf16 %v1615_v50  ;;  %v1659_v23 = vunpack.c.l.bf16 %v1621_v54  ;;  %v1661_v45 = vunpack.c.h.bf16 %v1621_v54 }
 0x251   : > { %v1556_v62 = vmax.f32 %v1406_v1, 0.0  ;;  %v1408_v46 = vadd.f32 %v1407_v36, %v3128_v12  ;;  %v1566_v12 = vmax.f32 %v3188_v11, 0.0  ;;  %v1434_v36 = vadd.f32 %v1433_v49, %v3134_v60 }
 0x252   : > { %v1411_v38 = vpop.f32.mrf.mxu0  ;;  %v1441_v59 = vpop.f32.mrf.mxu1  ;;  %v1436_v18 = vadd.f32 %v1435_v53, %v3136_v42  ;;  %v1966_v21 = vadd.f32 %v1904_v33, %v1902_v47  ;;  %v3201_v1 = vmul.f32 %v3172_v35, %v1658_v34  ;;  %v3204_v16 = vmul.f32 %v3174_v57, %v1660_v10 }
 0x253   : > { %v1616_v3 = vpack.c.bf16 %v1556_v62, %v1554_v2  ;;  %v1557_v56 = vmax.f32 %v1408_v46, 0.0  ;;  %v1412_v50 = vadd.f32 %v1411_v38, %v3130_v61  ;;  %v1903_v2 = vmul.f32 %v3160_v55, %v1647_v43  ;;  %v3216_v33 = vpop.permute.xlu1 %1814 }
 0x254   : > { %v1413_v9 = vpop.f32.mrf.mxu0  ;;  %v1443_v51 = vpop.f32.mrf.mxu1  ;;  %v1438_v54 = vadd.f32 %v1437_v39, %v3136_v42  ;;  %v1905_v62 = vmul.f32 %v3162_v31, %v1649_v19  ;;  %v3212_v46 = vmul.f32 %v3172_v35, %v1659_v23  ;;  %v3219_v55 = vmul.f32 %v3174_v57, %v1661_v45 }
 0x255   : > { %v1650_v5 = vunpack.c.l.bf16 %v1616_v3  ;;  %v1617_v26 = vpack.c.bf16 %v1557_v56, %v1555_v8  ;;  %v1414_v60 = vadd.f32 %v1413_v9, %v3130_v61  ;;  %v1567_v38 = vmax.f32 %v1434_v36, 0.0  ;;  %v3221_v9 = vpop.permute.xlu0 %1819 }
 0x256   : > { %v1415_v48 = vpop.f32.mrf.mxu0  ;;  %v1445_v17 = vpop.f32.mrf.mxu1  ;;  %v1652_v42 = vunpack.c.h.bf16 %v1616_v3  ;;  %v1568_v39 = vmax.f32 %v1436_v18, 0.0  ;;  %v1558_v10 = vmax.f32 %v1412_v50, 0.0  ;;  %v1442_v31 = vadd.f32 %v1441_v59, %v3138_v15 }
 0x257   : > { %v1651_v11 = vunpack.c.l.bf16 %v1617_v26  ;;  %v1906_v34 = vmul.f32 %v3164_v30, %v1650_v5  ;;  %v1416_v47 = vadd.f32 %v1415_v48, %v3132_v13  ;;  %v1569_v56 = vmax.f32 %v1438_v54, 0.0 }
 0x258   : > { %v1447_v0 = vpop.f32.mrf.mxu1  ;;  %v1417_v49 = vpop.f32.mrf.mxu0  ;;  %v1559_v48 = vmax.f32 %v1414_v60, 0.0  ;;  %v1444_v19 = vadd.f32 %v1443_v51, %v3138_v15  ;;  %v1446_v3 = vadd.f32 %v1445_v17, %v3140_v63  ;;  %v2003_v36 = vadd.f32 %v1905_v62, %v1903_v2 }
 0x259   : > { %v1560_v35 = vmax.f32 %v1416_v47, 0.0  ;;  %v1418_v43 = vadd.f32 %v1417_v49, %v3132_v13  ;;  %v1907_v8 = vmul.f32 %v3164_v30, %v1651_v11  ;;  %v1967_v23 = vadd.f32 %v1966_v21, %v1906_v34  ;;  %v3230_v11 = vpop.permute.xlu1 %1144  ;;  %v3232_v17 = vpop.permute.xlu0 %1824 }
 0x25a   : > { %v1451_v53 = vpop.f32.mrf.mxu1  ;;  %v1908_v18 = vmul.f32 %v3166_v20, %v1652_v42  ;;  %v1622_v50 = vpack.c.bf16 %v1568_v39, %v1566_v12  ;;  %v1653_v59 = vunpack.c.h.bf16 %v1617_v26  ;;  %v1448_v30 = vadd.f32 %v1447_v0, %v3140_v63 }
 0x25b   : > { %v1618_v5 = vpack.c.bf16 %v1560_v35, %v1558_v10  ;;  %v1561_v45 = vmax.f32 %v1418_v43, 0.0  ;;  %v2004_v15 = vadd.f32 %v2003_v36, %v1907_v8  ;;  %v1623_v51 = vpack.c.bf16 %v1569_v56, %v1567_v38 }
 0x25c   : > { %v1453_v61 = vpop.f32.mrf.mxu1  ;;  %v1570_v21 = vmax.f32 %v1442_v31, 0.0  ;;  %v1571_v54 = vmax.f32 %v1444_v19, 0.0  ;;  %v1968_v2 = vadd.f32 %v1967_v23, %v1908_v18  ;;  %v1572_v12 = vmax.f32 %v1446_v3, 0.0 }
 0x25d   : > { %v1654_v58 = vunpack.c.l.bf16 %v1618_v5  ;;  %v1656_v13 = vunpack.c.h.bf16 %v1618_v5  ;;  %v1619_v49 = vpack.c.bf16 %v1561_v45, %v1559_v48  ;;  %v1662_v34 = vunpack.c.l.bf16 %v1622_v50  ;;  %v3241_v5 = vpop.permute.xlu1 %1829 }
 0x25e   : > { %v1455_v57 = vpop.f32.mrf.mxu1  ;;  %v1909_v42 = vmul.f32 %v3166_v20, %v1653_v59  ;;  %v1573_v31 = vmax.f32 %v1448_v30, 0.0  ;;  %v1452_v35 = vadd.f32 %v1451_v53, %v3142_v6  ;;  %v1664_v43 = vunpack.c.h.bf16 %v1622_v50  ;;  %v3245_v50 = vpop.permute.xlu0 %1149 }
 0x25f   : > { %v1910_v62 = vmul.f32 %v3168_v52, %v1654_v58  ;;  %v1456_v26 = vadd.f32 %v1455_v57, %v3144_v37  ;;  %v1655_v39 = vunpack.c.l.bf16 %v1619_v49  ;;  %v1657_v63 = vunpack.c.h.bf16 %v1619_v49 }
 0x260   : > { %v1457_v47 = vpop.f32.mrf.mxu1  ;;  %v1912_v10 = vmul.f32 %v3170_v28, %v1656_v13  ;;  %v2005_v8 = vadd.f32 %v2004_v15, %v1909_v42  ;;  %v1663_v19 = vunpack.c.l.bf16 %v1623_v51  ;;  %v1624_v23 = vpack.c.bf16 %v1572_v12, %v1570_v21 }
 0x261   : > { %v1969_v38 = vadd.f32 %v1968_v2, %v1910_v62  ;;  %v1911_v56 = vmul.f32 %v3168_v52, %v1655_v39  ;;  %v1458_v58 = vadd.f32 %v1457_v47, %v3144_v37  ;;  %v1576_v20 = vmax.f32 %v1456_v26, 0.0 }
 0x262   : > { %v1461_v60 = vpop.f32.mrf.mxu1  ;;  %v1665_v3 = vunpack.c.h.bf16 %v1623_v51  ;;  %v1913_v45 = vmul.f32 %v3170_v28, %v1657_v63  ;;  %v1454_v18 = vadd.f32 %v1453_v61, %v3142_v6  ;;  %v1918_v52 = vmul.f32 %v3176_v22, %v1662_v34  ;;  %v3257_v63 = vpop.permute.xlu1 %1154 }
 0x263   : > { %v1970_v57 = vadd.f32 %v1969_v38, %v1912_v10  ;;  %v2006_v36 = vadd.f32 %v2005_v8, %v1911_v56  ;;  %v1625_v59 = vpack.c.bf16 %v1573_v31, %v1571_v54  ;;  %v1574_v47 = vmax.f32 %v1452_v35, 0.0 }
 0x264   : > { %v1463_v0 = vpop.f32.mrf.mxu1  ;;  %v1920_v13 = vmul.f32 %v3178_v32, %v1664_v43  ;;  %v1577_v30 = vmax.f32 %v1458_v58, 0.0  ;;  %v1919_v28 = vmul.f32 %v3176_v22, %v1663_v19  ;;  %v1666_v61 = vunpack.c.l.bf16 %v1624_v23 }
 0x265   : > { %v1971_v37 = vadd.f32 %v1970_v57, %v3201_v1  ;;  %v2007_v49 = vadd.f32 %v2006_v36, %v1913_v45  ;;  %v1626_v21 = vpack.c.bf16 %v1576_v20, %v1574_v47  ;;  %v1921_v2 = vmul.f32 %v3178_v32, %v1665_v3  ;;  %v3260_v32 = vpop.permute.xlu0 %1834 }
 0x266   : > { %v1465_v48 = vpop.f32.mrf.mxu1  ;;  %v1575_v1 = vmax.f32 %v1454_v18, 0.0  ;;  %v1462_v54 = vadd.f32 %v1461_v60, %v3146_v24  ;;  %v1668_v26 = vunpack.c.h.bf16 %v1624_v23  ;;  %v1667_v42 = vunpack.c.l.bf16 %v1625_v59 }
 0x267   : > { %v1466_v15 = vadd.f32 %v1465_v48, %v3148_v41  ;;  %v1972_v6 = vadd.f32 %v1971_v37, %v3204_v16  ;;  %v2008_v62 = vadd.f32 %v2007_v49, %v3212_v46  ;;  %v1669_v16 = vunpack.c.h.bf16 %v1625_v59  ;;  %v3270_v37 = vpop.permute.xlu1 %1839 }
 0x268   : > { %v1467_v53 = vpop.f32.mrf.mxu1  ;;  %v1627_v10 = vpack.c.bf16 %v1577_v30, %v1575_v1  ;;  %v1922_v46 = vmul.f32 %v3180_v7, %v1666_v61  ;;  %v1670_v60 = vunpack.c.l.bf16 %v1626_v21  ;;  %v1464_v43 = vadd.f32 %v1463_v0, %v3146_v24 }
 0x269   : > { %v1973_v34 = vadd.f32 %v1972_v6, %v1918_v52  ;;  %v1468_v39 = vadd.f32 %v1467_v53, %v3148_v41  ;;  %v2009_v22 = vadd.f32 %v2008_v62, %v3219_v55  ;;  %v1580_v38 = vmax.f32 %v1466_v15, 0.0  ;;  %v3274_v30 = vpop.permute.xlu0 %1159 }
 0x26a   : > { %v1471_v51 = vpop.f32.mrf.mxu1  ;;  %v1672_v56 = vunpack.c.h.bf16 %v1626_v21  ;;  %v1578_v58 = vmax.f32 %v1462_v54, 0.0  ;;  %v1924_v55 = vmul.f32 %v3183_v44, %v1668_v26  ;;  %v1923_v57 = vmul.f32 %v3180_v7, %v1667_v42 }
 0x26b   : > { %v1974_v35 = vadd.f32 %v1973_v34, %v1920_v13  ;;  %v2010_v8 = vadd.f32 %v2009_v22, %v1919_v28  ;;  %v1581_v23 = vmax.f32 %v1468_v39, 0.0  ;;  %v1671_v3 = vunpack.c.l.bf16 %v1627_v10 }
 0x26c   : > { %v1473_v12 = vpop.f32.mrf.mxu1  ;;  %v1628_v45 = vpack.c.bf16 %v1580_v38, %v1578_v58  ;;  %v1472_v36 = vadd.f32 %v1471_v51, %v3150_v40  ;;  %v1926_v24 = vmul.f32 %v3191_v29, %v1670_v60  ;;  %v1579_v0 = vmax.f32 %v1464_v43, 0.0 }
 0x26d   : > { %v1975_v19 = vadd.f32 %v1974_v35, %v1922_v46  ;;  %v2011_v20 = vadd.f32 %v2010_v8, %v1921_v2  ;;  %v1925_v59 = vmul.f32 %v3183_v44, %v1669_v16  ;;  %v1928_v7 = vmul.f32 %v3195_v14, %v1672_v56  ;;  %v3285_v35 = vpop.permute.xlu0 %1844 }
 0x26e   : > { %v1475_v31 = vpop.f32.mrf.mxu1  ;;  %v1673_v51 = vunpack.c.h.bf16 %v1627_v10  ;;  %v1629_v28 = vpack.c.bf16 %v1581_v23, %v1579_v0  ;;  %v1474_v6 = vadd.f32 %v1473_v12, %v3150_v40  ;;  %v1927_v21 = vmul.f32 %v3191_v29, %v1671_v3  ;;  %v3282_v12 = vpop.permute.xlu1 %1164  ;;  %v3374_v23 = vld [vmem:[#allocation4_spill] sm:$0xff] }
 0x26f   : > { %v1476_v41 = vadd.f32 %v1475_v31, %v3152_v27  ;;  %v1976_v53 = vadd.f32 %v1975_v19, %v1924_v55  ;;  %v2012_v47 = vadd.f32 %v2011_v20, %v1923_v57  ;;  %v1582_v2 = vmax.f32 %v1472_v36, 0.0 }
 0x270   : > { %v1477_v48 = vpop.f32.mrf.mxu1  ;;  %v1929_v22 = vmul.f32 %v3195_v14, %v1673_v51  ;;  %v1675_v16 = vunpack.c.l.bf16 %v1629_v28  ;;  %v1583_v10 = vmax.f32 %v1474_v6, 0.0  ;;  %v1676_v29 = vunpack.c.h.bf16 %v1628_v45 }
 0x271   : > { %v1478_v52 = vadd.f32 %v1477_v48, %v3152_v27  ;;  %v1584_v13 = vmax.f32 %v1476_v41, 0.0  ;;  %v1977_v15 = vadd.f32 %v1976_v53, %v1926_v24  ;;  %v2013_v61 = vadd.f32 %v2012_v47, %v1925_v59  ;;  %v3295_v59 = vpop.permute.xlu0 %1169 }
 0x272   : > { %v1481_v18 = vpop.f32.mrf.mxu1  ;;  %v1674_v27 = vunpack.c.l.bf16 %v1628_v45  ;;  %v1677_v48 = vunpack.c.h.bf16 %v1629_v28  ;;  %v1932_v19 = vmul.f32 %v3221_v9, %v1676_v29  ;;  %v3291_v53 = vpop.permute.xlu1 %1849 }
 0x273   : > { %v1585_v1 = vmax.f32 %v1478_v52, 0.0  ;;  %v1978_v54 = vadd.f32 %v1977_v15, %v1928_v7  ;;  %v2014_v26 = vadd.f32 %v2013_v61, %v1927_v21  ;;  %v1630_v34 = vpack.c.bf16 %v1584_v13, %v1582_v2 }
 0x274   : > { %v1483_v49 = vpop.f32.mrf.mxu1  ;;  %v1482_v42 = vadd.f32 %v1481_v18, %v3154_v25  ;;  %v1930_v38 = vmul.f32 %v3216_v33, %v1674_v27 }
 0x275   : > { %v2015_v60 = vadd.f32 %v2014_v26, %v1929_v22  ;;  %v1631_v43 = vpack.c.bf16 %v1585_v1, %v1583_v10  ;;  %v1484_v8 = vadd.f32 %v1483_v49, %v3154_v25  ;;  %v1678_v58 = vunpack.c.l.bf16 %v1630_v34  ;;  %v1855_v22 = vpop.permute.xlu0 %1854 }
 0x276   : > { %v1485_v62 = vpop.f32.mrf.mxu1  ;;  %v1979_v56 = vadd.f32 %v1978_v54, %v1930_v38  ;;  %v1586_v14 = vmax.f32 %v1482_v42, 0.0  ;;  %v1680_v47 = vunpack.c.h.bf16 %v1630_v34  ;;  %v3302_v26 = vpop.permute.xlu1 %1174 }
 0x277   : > { %v1486_v44 = vadd.f32 %v1485_v62, %v3156_v4  ;;  %v1679_v36 = vunpack.c.l.bf16 %v1631_v43  ;;  %v1587_v18 = vmax.f32 %v1484_v8, 0.0  ;;  %v1934_v24 = vmul.f32 %v3232_v17, %v1678_v58 }
 0x278   : > { %v1487_v39 = vpop.f32.mrf.mxu1  ;;  %v1980_v25 = vadd.f32 %v1979_v56, %v1932_v19  ;;  %v1681_v21 = vunpack.c.h.bf16 %v1631_v43 }
 0x279   : > { %v1488_v40 = vadd.f32 %v1487_v39, %v3156_v4  ;;  %v1588_v31 = vmax.f32 %v1486_v44, 0.0  ;;  %v1931_v4 = vmul.f32 %v3216_v33, %v1675_v16  ;;  %v1933_v33 = vmul.f32 %v3221_v9, %v1677_v48 }
 0x27a   : > { %v1491_v46 = vpop.f32.mrf.mxu1  ;;  %v1935_v27 = vmul.f32 %v3232_v17, %v1679_v36  ;;  %v1981_v2 = vadd.f32 %v1980_v25, %v1934_v24  ;;  %v1937_v16 = vmul.f32 %v3241_v5, %v1681_v21  ;;  %v3311_v19 = vpop.permute.xlu1 %1859 }
 0x27b   : > { %v1589_v55 = vmax.f32 %v1488_v40, 0.0  ;;  %v1632_v57 = vpack.c.bf16 %v1588_v31, %v1586_v14  ;;  %v1492_v20 = vadd.f32 %v1491_v46, %v3374_v23  ;;  %v2016_v45 = vadd.f32 %v2015_v60, %v1931_v4 }
 0x27c   : > { %v1493_v41 = vpop.f32.mrf.mxu1 }
 0x27d   : > { %v1633_v7 = vpack.c.bf16 %v1589_v55, %v1587_v18  ;;  %v1682_v49 = vunpack.c.l.bf16 %v1632_v57  ;;  %v1590_v15 = vmax.f32 %v1492_v20, 0.0  ;;  %v1494_v51 = vadd.f32 %v1493_v41, %v3374_v23 }
 0x27e   : > { %v1495_v3 = vpop.f32.mrf.mxu1  ;;  %v2017_v61 = vadd.f32 %v2016_v45, %v1933_v33  ;;  %v1684_v17 = vunpack.c.h.bf16 %v1632_v57 }
 0x27f   : > { %v1496_v0 = vadd.f32 %v1495_v3, %v3230_v11  ;;  %v1683_v54 = vunpack.c.l.bf16 %v1633_v7  ;;  %v1938_v34 = vmul.f32 %v3260_v32, %v1682_v49  ;;  %v1591_v42 = vmax.f32 %v1494_v51, 0.0 }
 0x280   : > { %v1497_v52 = vpop.f32.mrf.mxu1  ;;  %v2018_v10 = vadd.f32 %v2017_v61, %v1935_v27  ;;  %v1940_v57 = vmul.f32 %v3270_v37, %v1684_v17  ;;  %v1185_v61 = vpop.permute.xlu1 %1184 }
 0x281   : > { %v1498_v13 = vadd.f32 %v1497_v52, %v3230_v11  ;;  %v1592_v28 = vmax.f32 %v1496_v0, 0.0  ;;  %v1936_v11 = vmul.f32 %v3241_v5, %v1680_v47  ;;  %v1939_v43 = vmul.f32 %v3260_v32, %v1683_v54  ;;  %v3315_v32 = vpop.permute.xlu0 %1179 }
 0x282   : > { %v1501_v6 = vpop.f32.mrf.mxu1  ;;  %v2019_v48 = vadd.f32 %v2018_v10, %v1937_v16  ;;  %v1685_v5 = vunpack.c.h.bf16 %v1633_v7 }
 0x283   : > { %v1634_v62 = vpack.c.bf16 %v1592_v28, %v1590_v15  ;;  %v1593_v1 = vmax.f32 %v1498_v13, 0.0  ;;  %v1502_v9 = vadd.f32 %v1501_v6, %v3245_v50  ;;  %v1982_v29 = vadd.f32 %v1981_v2, %v1936_v11 }
 0x284   : > { %v1503_v44 = vpop.f32.mrf.mxu1  ;;  %v2020_v45 = vadd.f32 %v2019_v48, %v1939_v43  ;;  %v1941_v52 = vmul.f32 %v3270_v37, %v1685_v5 }
 0x285   : > { %v1686_v38 = vunpack.c.l.bf16 %v1634_v62  ;;  %v1635_v31 = vpack.c.bf16 %v1593_v1, %v1591_v42  ;;  %v1504_v46 = vadd.f32 %v1503_v44, %v3245_v50  ;;  %v1594_v8 = vmax.f32 %v1502_v9, 0.0  ;;  %v1865_v1 = vpop.permute.xlu0 %1864 }
 0x286   : > { %v1505_v39 = vpop.f32.mrf.mxu1  ;;  %v1983_v14 = vadd.f32 %v1982_v29, %v1938_v34  ;;  %v1688_v36 = vunpack.c.h.bf16 %v1634_v62  ;;  %v2021_v15 = vadd.f32 %v2020_v45, %v1941_v52 }
 0x287   : > { %v1506_v40 = vadd.f32 %v1505_v39, %v3257_v63  ;;  %v1942_v23 = vmul.f32 %v3285_v35, %v1686_v38  ;;  %v1687_v50 = vunpack.c.l.bf16 %v1635_v31  ;;  %v1595_v20 = vmax.f32 %v1504_v46, 0.0 }
 0x288   : > { %v1507_v60 = vpop.f32.mrf.mxu1  ;;  %v1944_v51 = vmul.f32 %v3291_v53, %v1688_v36  ;;  %v1689_v28 = vunpack.c.h.bf16 %v1635_v31  ;;  %v1870_v31 = vpop.permute.xlu1 %1869 }
 0x289   : > { %v1596_v56 = vmax.f32 %v1506_v40, 0.0  ;;  %v1508_v58 = vadd.f32 %v1507_v60, %v3257_v63  ;;  %v1984_v63 = vadd.f32 %v1983_v14, %v1940_v57  ;;  %v1943_v7 = vmul.f32 %v3285_v35, %v1687_v50 }
 0x28a   : > { %v1511_v41 = vpop.f32.mrf.mxu1  ;;  %v1945_v16 = vmul.f32 %v3291_v53, %v1689_v28 }
 0x28b   : > { %v1636_v4 = vpack.c.bf16 %v1596_v56, %v1594_v8  ;;  %v1597_v55 = vmax.f32 %v1508_v58, 0.0  ;;  %v1512_v24 = vadd.f32 %v1511_v41, %v3274_v30  ;;  %v1985_v47 = vadd.f32 %v1984_v63, %v1942_v23  ;;  %v1190_v58 = vpop.permute.xlu0 %1189 }
 0x28c   : > { %v1513_v3 = vpop.f32.mrf.mxu1  ;;  %v2022_v35 = vadd.f32 %v2021_v15, %v1943_v7 }
 0x28d   : > { %v1690_v18 = vunpack.c.l.bf16 %v1636_v4  ;;  %v1637_v25 = vpack.c.bf16 %v1597_v55, %v1595_v20  ;;  %v1514_v33 = vadd.f32 %v1513_v3, %v3274_v30  ;;  %v1598_v2 = vmax.f32 %v1512_v24, 0.0 }
 0x28e   : > { %v1515_v0 = vpop.f32.mrf.mxu1  ;;  %v1986_v54 = vadd.f32 %v1985_v47, %v1944_v51  ;;  %v1692_v9 = vunpack.c.h.bf16 %v1636_v4  ;;  %v2023_v46 = vadd.f32 %v2022_v35, %v1945_v16 }
 0x28f   : > { %v1516_v13 = vadd.f32 %v1515_v0, %v3282_v12  ;;  %v1946_v21 = vmul.f32 %v1855_v22, %v1690_v18  ;;  %v1691_v27 = vunpack.c.l.bf16 %v1637_v25  ;;  %v1599_v30 = vmax.f32 %v1514_v33, 0.0  ;;  %v1875_v52 = vpop.permute.xlu0 %1874 }
 0x290   : > { %v1517_v49 = vpop.f32.mrf.mxu1  ;;  %v1948_v60 = vmul.f32 %v3311_v19, %v1692_v9  ;;  %v1693_v43 = vunpack.c.h.bf16 %v1637_v25  ;;  %v1195_v25 = vpop.permute.xlu1 %1194 }
 0x291   : > { %v1518_v6 = vadd.f32 %v1517_v49, %v3282_v12  ;;  %v1600_v62 = vmax.f32 %v1516_v13, 0.0  ;;  %v1987_v12 = vadd.f32 %v1986_v54, %v1946_v21  ;;  %v1947_v10 = vmul.f32 %v1855_v22, %v1691_v27 }
 0x292   : > { %v1521_v37 = vpop.f32.mrf.mxu1  ;;  %v1949_v50 = vmul.f32 %v3311_v19, %v1693_v43 }
 0x293   : > { %v1601_v44 = vmax.f32 %v1518_v6, 0.0  ;;  %v1638_v11 = vpack.c.bf16 %v1600_v62, %v1598_v2  ;;  %v1522_v39 = vadd.f32 %v1521_v37, %v3295_v59  ;;  %v1988_v22 = vadd.f32 %v1987_v12, %v1948_v60 }
 0x294   : > { %v1523_v34 = vpop.f32.mrf.mxu1  ;;  %v2024_v5 = vadd.f32 %v2023_v46, %v1947_v10 }
 0x295   : > { %v1639_v42 = vpack.c.bf16 %v1601_v44, %v1599_v30  ;;  %v1694_v17 = vunpack.c.l.bf16 %v1638_v11  ;;  %v1524_v29 = vadd.f32 %v1523_v34, %v3295_v59  ;;  %v1602_v41 = vmax.f32 %v1522_v39, 0.0  ;;  %v1880_v44 = vpop.permute.xlu1 %1879 }
 0x296   : > { %v1525_v40 = vpop.f32.mrf.mxu1  ;;  %v1696_v55 = vunpack.c.h.bf16 %v1638_v11  ;;  %v2025_v24 = vadd.f32 %v2024_v5, %v1949_v50 }
 0x297   : > { %v1526_v38 = vadd.f32 %v1525_v40, %v3302_v26  ;;  %v1695_v8 = vunpack.c.l.bf16 %v1639_v42  ;;  %v1950_v14 = vmul.f32 %v1865_v1, %v1694_v17  ;;  %v1603_v59 = vmax.f32 %v1524_v29, 0.0 }
 0x298   : > { %v1527_v56 = vpop.f32.mrf.mxu1  ;;  %v1697_v36 = vunpack.c.h.bf16 %v1639_v42  ;;  %v1952_v33 = vmul.f32 %v1870_v31, %v1696_v55 }
 0x299   : > { %v1604_v48 = vmax.f32 %v1526_v38, 0.0  ;;  %v1528_v53 = vadd.f32 %v1527_v56, %v3302_v26  ;;  %v1951_v20 = vmul.f32 %v1865_v1, %v1695_v8  ;;  %v1989_v45 = vadd.f32 %v1988_v22, %v1950_v14 }
 0x29a   : > { %v1531_v4 = vpop.f32.mrf.mxu1  ;;  %v1953_v28 = vmul.f32 %v1870_v31, %v1697_v36 }
 0x29b   : > { %v1640_v57 = vpack.c.bf16 %v1604_v48, %v1602_v41  ;;  %v1605_v23 = vmax.f32 %v1528_v53, 0.0  ;;  %v1532_v0 = vadd.f32 %v1531_v4, %v3315_v32  ;;  %v2026_v13 = vadd.f32 %v2025_v24, %v1951_v20  ;;  %v1890_v48 = vpop.permute.xlu1 %1889 }
 0x29c   : > { %v1533_v3 = vpop.f32.mrf.mxu1  ;;  %v1990_v51 = vadd.f32 %v1989_v45, %v1952_v33 }
 0x29d   : > { %v1698_v63 = vunpack.c.l.bf16 %v1640_v57  ;;  %v1641_v18 = vpack.c.bf16 %v1605_v23, %v1603_v59  ;;  %v1534_v7 = vadd.f32 %v1533_v3, %v3315_v32  ;;  %v1700_v21 = vunpack.c.h.bf16 %v1640_v57 }
 0x29e   : > { %v1535_v26 = vpop.f32.mrf.mxu1  ;;  %v1606_v2 = vmax.f32 %v1532_v0, 0.0  ;;  %v2027_v54 = vadd.f32 %v2026_v13, %v1953_v28 }
 0x29f   : > { %v1699_v47 = vunpack.c.l.bf16 %v1641_v18  ;;  %v1954_v49 = vmul.f32 %v1875_v52, %v1698_v63  ;;  %v1536_v15 = vadd.f32 %v1535_v26, %v1185_v61  ;;  %v1607_v1 = vmax.f32 %v1534_v7, 0.0  ;;  %v1900_v0 = vpop.permute.xlu1 %1899 }
 0x2a0   : > { %v1537_v19 = vpop.f32.mrf.mxu1  ;;  %v1701_v9 = vunpack.c.h.bf16 %v1641_v18  ;;  %v1956_v39 = vmul.f32 %v1880_v44, %v1700_v21 }
 0x2a1   : > { %v1538_v6 = vadd.f32 %v1537_v19, %v1185_v61  ;;  %v1955_v27 = vmul.f32 %v1875_v52, %v1699_v47  ;;  %v1608_v62 = vmax.f32 %v1536_v15, 0.0  ;;  %v1991_v35 = vadd.f32 %v1990_v51, %v1954_v49  ;;  %v1885_v61 = vpop.permute.xlu0 %1884 }
 0x2a2   : > { %v1541_v37 = vpop.f32.mrf.mxu1  ;;  %v1957_v31 = vmul.f32 %v1880_v44, %v1701_v9  ;;  %v2046_v47 = vlaneseq }
 0x2a3   : > { %v1609_v30 = vmax.f32 %v1538_v6, 0.0  ;;  %v1642_v11 = vpack.c.bf16 %v1608_v62, %v1606_v2  ;;  %v1542_v42 = vadd.f32 %v1541_v37, %v1190_v58  ;;  %v2028_v16 = vadd.f32 %v2027_v54, %v1955_v27 }
 0x2a4   : > { %v1543_v32 = vpop.f32.mrf.mxu1  ;;  %v1992_v38 = vadd.f32 %v1991_v35, %v1956_v39  ;;  %v2047_v51 = vshrl.u32 %v2046_v47, 7  ;;  %vm2084_vm1 = vcmp.lt.s32.totalorder %v2046_v47, 256 }
 0x2a5   : > { %v1643_v34 = vpack.c.bf16 %v1609_v30, %v1607_v1  ;;  %v1702_v12 = vunpack.c.l.bf16 %v1642_v11  ;;  %v1544_v40 = vadd.f32 %v1543_v32, %v1190_v58  ;;  %v1704_v46 = vunpack.c.h.bf16 %v1642_v11  ;;  %v1895_v3 = vpop.permute.xlu0 %1894 }
 0x2a6   : > { %v1545_v10 = vpop.f32.mrf.mxu1  ;;  %v1610_v56 = vmax.f32 %v1542_v42, 0.0  ;;  %v2029_v53 = vadd.f32 %v2028_v16, %v1957_v31  ;;  %v2048_v2 = vsub.s32 0, %v2047_v51 }
 0x2a7   : > { %v1703_v17 = vunpack.c.l.bf16 %v1643_v34  ;;  %v1546_v29 = vadd.f32 %v1545_v10, %v1195_v25  ;;  %v1958_v60 = vmul.f32 %v1885_v61, %v1702_v12  ;;  %v1705_v22 = vunpack.c.h.bf16 %v1643_v34 }
 0x2a8   : > { %v1547_v43 = vpop.f32.mrf.mxu1  ;;  %v1611_v4 = vmax.f32 %v1544_v40, 0.0  ;;  %v1960_v57 = vmul.f32 %v1890_v48, %v1704_v46 }
 0x2a9   : > { %v1959_v8 = vmul.f32 %v1885_v61, %v1703_v17  ;;  %v1612_v14 = vmax.f32 %v1546_v29, 0.0  ;;  %v1548_v41 = vadd.f32 %v1547_v43, %v1195_v25  ;;  %v1993_v5 = vadd.f32 %v1992_v38, %v1958_v60  ;;  %v2044_v1 = vpop.permute.xlu0 %2043 }
 0x2aa   : > { %v1961_v45 = vmul.f32 %v1890_v48, %v1705_v22  ;;  %v2049_v54 = vrot.slane %v2044_v1, %v2048_v2  ;;  %v2402_v17 = vmov 1966171168  }
 0x2ab   : > { %v1644_v55 = vpack.c.bf16 %v1612_v14, %v1610_v56  ;;  %v1613_v59 = vmax.f32 %v1548_v41, 0.0  ;;  %v2030_v23 = vadd.f32 %v2029_v53, %v1959_v8  ;;  %v1994_v36 = vadd.f32 %v1993_v5, %v1960_v57 }
 0x2ac   : > { %v2068_v40 = vunpack.c.l.s4 %v2402_v17 }
 0x2ad   : > { %v1706_v58 = vunpack.c.l.bf16 %v1644_v55  ;;  %v1708_v50 = vunpack.c.h.bf16 %v1644_v55  ;;  %v1645_v20 = vpack.c.bf16 %v1613_v59, %v1611_v4  ;;  %v2031_v25 = vadd.f32 %v2030_v23, %v1961_v45 }
 0x2ae   : > { %v2069_v29 = vunpack.c.0.s8 %v2068_v40 }
 0x2af   : > { %v1962_v63 = vmul.f32 %v1895_v3, %v1706_v58  ;;  %v1707_v18 = vunpack.c.l.bf16 %v1645_v20  ;;  %v1709_v24 = vunpack.c.h.bf16 %v1645_v20  ;;  %v1964_v26 = vmul.f32 %v1900_v0, %v1708_v50 }
 0x2b0   : > { %v2072_v31 = vsub.s32 %v2069_v29, %v2047_v51 }
 0x2b1   : > { %v1995_v52 = vadd.f32 %v1994_v36, %v1962_v63  ;;  %v1963_v33 = vmul.f32 %v1895_v3, %v1707_v18  ;;  %v1965_v13 = vmul.f32 %v1900_v0, %v1709_v24 }
 0x2b3   : > { %v1996_v7 = vadd.f32 %v1995_v52, %v1964_v26  ;;  %v2032_v49 = vadd.f32 %v2031_v25, %v1963_v33 }
 0x2b5   : > { %v1997_v15 = vrot.slane %v1996_v7, 4  ;;  %v2033_v19 = vadd.f32 %v2032_v49, %v1965_v13 }
 0x2b7   : > { %v1998_v28 = vadd.f32 %v1997_v15, %v1996_v7  ;;  %v2034_v6 = vrot.slane %v2033_v19, 4 }
 0x2b9   : > { %v1999_v21 = vrot.slane %v1998_v28, 2  ;;  %v2035_v27 = vadd.f32 %v2034_v6, %v2033_v19 }
 0x2bb   : > { %v2000_v62 = vadd.f32 %v1999_v21, %v1998_v28  ;;  %v2036_v37 = vrot.slane %v2035_v27, 2 }
 0x2bd   : > { %v2001_v30 = vrot.slane %v2000_v62, 1  ;;  %v2037_v44 = vadd.f32 %v2036_v37, %v2035_v27 }
 0x2bf   : > { %v2002_v35 = vadd.f32 %v2001_v30, %v2000_v62  ;;  %v2038_v9 = vrot.slane %v2037_v44, 1 }
 0x2c1   : > { %v2050_v11 = vadd.f32 %v2049_v54, %v2002_v35  ;;  %v2039_v32 = vadd.f32 %v2038_v9, %v2037_v44 }
 0x2c3   : > { %v2240_v34 = vmul.f32 -1.442695, %v2050_v11  ;;  %v2051_v42 = vadd.f32 %v2049_v54, %v2039_v32 }
 0x2c5   : > { %2369 = vpow2.f32 %v2240_v34  ;;  %v2241_v39 = vmul.f32 -1.442695, %v2051_v42 }
 0x2c7   : > { %2371 = vpow2.f32 %v2241_v39 }
 0x2d2   : > { %v2370_v16 = vpop.eup %2369 }
 0x2d3   : > { %v2058_v12 = vadd.f32 1.0, %v2370_v16 }
 0x2d4   : > { %v2372_v10 = vpop.eup %2371 }
 0x2d5   : > { %v2059_v61 = vadd.f32 1.0, %v2372_v10  ;;  %2373 = vrcp.f32 %v2058_v12 }
 0x2d7   : > { %2375 = vrcp.f32 %v2059_v61 }
 0x2e2   : > { %v2374_v38 = vpop.eup %2373 }
 0x2e4   : > { %v2376_v46 = vpop.eup %2375 }
 0x2e5   : > { %v2066_v60 = vcombine.low %v2374_v38, %v2376_v46 }
 0x2e7   : > { %v2073_v43 = vrot.slane %v2066_v60, %v2072_v31 }
 0x2e9   : > { %v2080_v8 = vrot.slane %v2073_v43, %v2072_v31 }
 0x2eb   : > { %2086 = vst.msk [vmem:[%s316_s21] sm:$0x3] %vm2084_vm1, %v2080_v8 }
 0x2ec PF: > { %s19_s28 = sadd.s32 1, %s2399_s28   ;;  %s3375_s26 = smov %s2395_s27 }
 0x2ed   : > { %p16_p5 = scmp.ge.s32.totalorder %s19_s28, 4   ;;  %s3376_s27 = smov %s3378_s6 }
 0x2ef   :  { %18 = sbr.rel (!%p16_p5) target bundleno = 3 (0x3), region = 78 }

</bundles_post_ra>
